<compile_context>
chip_gen: v5e
topology: v5e:2x2
jax: 0.10.0
libtpu: 0.0.40
codegen_flags: <defaults>
</compile_context>

<pallas_src>
import functools
import math

import jax
import jax.numpy as jnp
import numpy as np
from jax.experimental import pallas as pl
from jax.experimental.pallas import tpu as pltpu

_MASK_VALUE = -1e30  # large finite negative (avoids inf-inf corner cases)


def _supcon_kernel(inv_p_ref, row_lab_ref, col_lab_ref, *refs,
                   inv_temp, loss_scale, n_valid, block_m, block_n, resident):
    """One (row-tile i, col-tile j) step of the flash-style SupCon forward.

    inv_p_ref:   [TM, 1] f32   1 / (#positives) per anchor row (0 on padding)
    row_lab_ref: [TM, 1] i32   anchor-row labels
    col_lab_ref: [n_pad//TN, TN] i32  all contrast labels (VMEM resident)
    resident:    feats_ref [N_pad, D] (VMEM resident), A/B sliced in-kernel
    streamed:    a_ref [TM, D], b_ref [TN, D] streamed per tile
    out_ref:     [TM, 1] f32   per-anchor loss (written on the last col tile)
    scratch:     m (running max), l (running exp-sum), s (sum pos*logit)
    """
    if resident:
        feats_ref, out_ref, m_ref, l_ref, s_ref = refs
    else:
        a_ref, b_ref, out_ref, m_ref, l_ref, s_ref = refs

    i = pl.program_id(0)
    j = pl.program_id(1)
    last_j = pl.num_programs(1) - 1

    @pl.when(j == 0)
    def _init():
        m_ref[...] = jnp.full((block_m, 1), _MASK_VALUE, dtype=jnp.float32)
        l_ref[...] = jnp.zeros((block_m, 1), dtype=jnp.float32)
        s_ref[...] = jnp.zeros((block_m, 1), dtype=jnp.float32)

    if resident:
        a = feats_ref[pl.ds(pl.multiple_of(i * block_m, block_m), block_m), :]
        b = feats_ref[pl.ds(pl.multiple_of(j * block_n, block_n), block_n), :]
    else:
        a = a_ref[...]
        b = b_ref[...]

    # Gram tile on the MXU: bf16 x bf16 -> f32 accumulation, contracting the
    # feature dim of both operands (A @ B^T without materialising B^T).
    logits = jax.lax.dot_general(
        a, b, dimension_numbers=(((1,), (1,)), ((), ())),
        preferred_element_type=jnp.float32,
    ) * inv_temp                                                  # [TM, TN] f32

    # Global row / col ids: padding validity and self-contrast exclusion with
    # one small iota each (correct for any block_m / block_n combination).
    row_ids = i * block_m + jax.lax.broadcasted_iota(jnp.int32, (block_m, 1), 0)
    col_ids = j * block_n + jax.lax.broadcasted_iota(jnp.int32, (1, block_n), 1)
    col_valid = col_ids < n_valid                                 # [1, TN] bool
    is_self = row_ids == col_ids                                  # [TM, TN] bool
    denom_mask = jnp.where(is_self, 0.0, col_valid.astype(jnp.float32))

    # Positive-pair mask built from labels (no NxN mask in HBM / VMEM).
    col_lab = col_lab_ref[pl.ds(j, 1), :]                         # [1, TN] i32
    pos_mask = (row_lab_ref[...] == col_lab).astype(jnp.float32) * denom_mask

    # Online (flash-style) log-sum-exp over the contrast dimension.  The max
    # includes the self logit (as in the PyTorch code); the exp-sum excludes
    # self and padded columns.
    m_prev = m_ref[...]
    tile_max = jnp.max(jnp.where(col_valid, logits, _MASK_VALUE),
                       axis=1, keepdims=True)                     # [TM, 1]
    m_new = jnp.maximum(m_prev, tile_max)
    alpha = jnp.exp(m_prev - m_new)
    exp_l = jnp.exp(logits - m_new) * denom_mask
    l_ref[...] = alpha * l_ref[...] + jnp.sum(exp_l, axis=1, keepdims=True)
    m_ref[...] = m_new

    # Positive statistic; the max subtraction cancels analytically:
    #   mean_pos(log_prob) = sum(pos * logit) / pos_count - LSE
    s_ref[...] += jnp.sum(pos_mask * logits, axis=1, keepdims=True)

    @pl.when(j == last_j)
    def _finalize():
        lse = m_ref[...] + jnp.log(l_ref[...])
        # 1/pos_count is precomputed in the wrapper (0 for padded rows, so the
        # padded tail of the per-row output stays finite).
        out_ref[...] = loss_scale * (s_ref[...] * inv_p_ref[...] - lse)


def _round_up(x, m):
    return (x + m - 1) // m * m


def _vmem_capacity_bytes():
    try:
        return int(pltpu.get_tpu_info().vmem_capacity_bytes)
    except Exception:
        return 64 * 1024 * 1024   # conservative: v7x per-TensorCore VMEM


def supcon_loss(features, labels=None, mask=None, *, temperature=0.07,
                contrast_mode="all", base_temperature=0.07,
                block_m=None, block_n=None, compute_dtype=jnp.bfloat16,
                resident=None, vmem_limit_bytes=None):
    """JAX/Pallas equivalent of SupConLoss.forward (contrast_mode='all').

    Notes:
      * Features are cast to `compute_dtype` (bf16 default) for the MXU Gram
        matmul; accumulation / softmax math stay f32 (PyTorch ref is f32).
      * A valid anchor with zero positive pairs divides by zero and poisons
        the mean with NaN, matching the PyTorch reference's behaviour.
    """
    if features.ndim < 3:
        raise ValueError("`features` needs to be [bsz, n_views, ...]")
    if features.ndim > 3:
        features = features.reshape(features.shape[0], features.shape[1], -1)
    bsz, n_views, dim = features.shape

    if labels is not None and mask is not None:
        raise ValueError("Cannot define both `labels` and `mask`")
    if mask is not None:
        # TODO(synk): arbitrary (possibly asymmetric) user-supplied masks are not
        # supported by the label-based in-kernel mask generation.
        raise NotImplementedError("explicit `mask` path not implemented")
    if contrast_mode != "all":
        # TODO(synk): contrast_mode='one' not implemented (module default is 'all').
        raise NotImplementedError("only contrast_mode='all' is implemented")

    if labels is None:
        # SimCLR: mask = eye(bsz)  <=>  per-sample group ids 0..bsz-1.
        group_ids = jnp.arange(bsz, dtype=jnp.int32)
    else:
        labels = jnp.asarray(labels).reshape(-1)
        if labels.shape[0] != bsz:
            raise ValueError("Num of labels does not match num of features")
        group_ids = labels.astype(jnp.int32)

    n_total = n_views * bsz
    n_min = _round_up(n_total, 128)

    # --- tile selection -----------------------------------------------------
    if block_n is None:
        block_n = min(256, n_min)        # 256 matches the v6e/v7x MXU width
    if block_m is None:
        block_m = min(256, n_min)
        # Keep >= 2 row tiles when possible so the "parallel" row axis can be
        # sharded across both v7x TensorCores.
        if n_min >= 256 and n_min // block_m < 2:
            block_m = max(128, (n_min // 2) - (n_min // 2) % 128)
    if block_m % 128 or block_n % 128:
        raise ValueError("block_m / block_n must be multiples of 128")

    n_pad = _round_up(n_total, math.lcm(block_m, block_n))
    d_pad = _round_up(dim, 128)
    itemsize = jnp.dtype(compute_dtype).itemsize

    # --- VMEM planning --------------------------------------------------------
    capacity = _vmem_capacity_bytes()
    feats_resident_bytes = 2 * n_pad * d_pad * itemsize   # 2 pipeline buffers
    if resident is None:
        resident = feats_resident_bytes + (8 << 20) <= min(capacity // 2, 40 << 20)
    if vmem_limit_bytes is None:
        feats_bytes = (feats_resident_bytes if resident
                       else 2 * (block_m + block_n) * d_pad * itemsize)
        small_bytes = 12 * block_m * 128 * 4     # [TM,1] blocks lane-pad to 128
        work_bytes = 16 * block_m * block_n * 4  # tile temporaries (generous)
        est = feats_bytes + 8 * n_pad + small_bytes + work_bytes + (4 << 20)
        vmem_limit_bytes = int(min(max(est, 32 << 20), (capacity * 3) // 4))

    # --- input preparation ----------------------------------------------------
    # contrast_feature = torch.cat(torch.unbind(features, dim=1), dim=0)
    # (view-major row order).  bf16 for the MXU; zero-pad N and D.
    contrast = jnp.transpose(features, (1, 0, 2)).reshape(n_total, dim)
    feats = jnp.zeros((n_pad, d_pad), dtype=compute_dtype)
    feats = feats.at[:n_total, :dim].set(contrast.astype(compute_dtype))

    # Repeated label vector replaces mask.repeat(anchor_count, contrast_count).
    # The -1 sentinel never matters: padded columns are masked via col_valid
    # in-kernel and padded rows are sliced off below.
    labels_rep = jnp.tile(group_ids, n_views)
    labels_pad = jnp.full((n_pad,), -1, dtype=jnp.int32).at[:n_total].set(labels_rep)
    labels_row = labels_pad.reshape(n_pad, 1)
    labels_col = labels_pad.reshape(n_pad // block_n, block_n)

    # Positive-pair count per anchor, hoisted out of the kernel:
    #   pos_count = n_views * (#samples with the same label) - 1   (minus self)
    counts = jnp.sum(group_ids[:, None] == group_ids[None, :], axis=1)
    pos_count = (n_views * counts - 1).astype(jnp.float32)
    inv_p = jnp.zeros((n_pad, 1), jnp.float32).at[:n_total, 0].set(
        1.0 / jnp.tile(pos_count, n_views))

    grid = (n_pad // block_m, n_pad // block_n)
    kernel = functools.partial(
        _supcon_kernel,
        inv_temp=float(1.0 / temperature),
        loss_scale=float(-(temperature / base_temperature)),
        n_valid=n_total, block_m=block_m, block_n=block_n, resident=resident)

    row_spec = pl.BlockSpec((block_m, 1), lambda i, j: (i, 0))
    col_lab_spec = pl.BlockSpec((n_pad // block_n, block_n), lambda i, j: (0, 0))
    if resident:
        # Full features resident in VMEM; fetched from HBM exactly once.
        feat_specs = [pl.BlockSpec((n_pad, d_pad), lambda i, j: (0, 0))]
        feat_args = (feats,)
    else:
        # Streamed fallback for N too large to hold resident in VMEM.
        # (pipeline_mode=pl.Buffered(3) on the contrast spec is a further
        #  option here if the per-step DMA latency is exposed.)
        feat_specs = [pl.BlockSpec((block_m, d_pad), lambda i, j: (i, 0)),
                      pl.BlockSpec((block_n, d_pad), lambda i, j: (j, 0))]
        feat_args = (feats, feats)

    per_row = pl.pallas_call(
        kernel,
        out_shape=jax.ShapeDtypeStruct((n_pad, 1), jnp.float32),
        grid_spec=pltpu.PrefetchScalarGridSpec(
            num_scalar_prefetch=0,
            grid=grid,
            in_specs=[row_spec, row_spec, col_lab_spec] + feat_specs,
            out_specs=pl.BlockSpec((block_m, 1), lambda i, j: (i, 0)),
            scratch_shapes=[pltpu.VMEM((block_m, 1), jnp.float32)] * 3,
        ),
        compiler_params=pltpu.CompilerParams(
            dimension_semantics=("parallel", "arbitrary"),
            vmem_limit_bytes=vmem_limit_bytes,
        ),
    )(inv_p, labels_row, labels_col, *feat_args)

    # loss.view(anchor_count, batch_size).mean() == mean over all N anchor rows.
    return jnp.mean(per_row[:n_total, 0])


def _supcon_loss_ref(features, labels, temperature=0.07, base_temperature=0.07):
    """Pure-JAX reference mirroring the PyTorch code (contrast_mode='all')."""
    bsz, n_views, dim = features.shape
    mask = (labels.reshape(-1, 1) == labels.reshape(1, -1)).astype(jnp.float32)
    cf = jnp.transpose(features, (1, 0, 2)).reshape(n_views * bsz, dim)
    adc = (cf @ cf.T) / temperature
    logits = adc - jnp.max(adc, axis=1, keepdims=True)
    n = n_views * bsz
    logits_mask = 1.0 - jnp.eye(n, dtype=jnp.float32)
    mask = jnp.tile(mask, (n_views, n_views)) * logits_mask
    exp_logits = jnp.exp(logits) * logits_mask
    log_prob = logits - jnp.log(exp_logits.sum(1, keepdims=True))
    mean_log_prob_pos = (mask * log_prob).sum(1) / mask.sum(1)
    loss = -(temperature / base_temperature) * mean_log_prob_pos
    return loss.mean()


if __name__ == "__main__":
    def make_inputs(key, bsz, n_views, dim, n_classes):
        k_feat, k_lab = jax.random.split(key)
        feats = jax.random.normal(k_feat, (bsz, n_views, dim), dtype=jnp.float32)
        feats = feats / jnp.linalg.norm(feats, axis=-1, keepdims=True)
        labels = jax.random.randint(k_lab, (bsz,), 0, n_classes, dtype=jnp.int32)
        return feats, labels

    key = jax.random.PRNGKey(0)
    k1, k2, k3 = jax.random.split(key, 3)

    # Case 1: small single-tile problem (typical MNIST pre-train scale).
    feats, labels = make_inputs(k1, 8, 2, 32, 4)
    loss = jax.block_until_ready(supcon_loss(feats, labels=labels))
    feats_bf16 = feats.astype(jnp.bfloat16).astype(jnp.float32)
    np.testing.assert_allclose(np.asarray(loss),
                               np.asarray(_supcon_loss_ref(feats_bf16, labels)),
                               rtol=1e-3, atol=1e-3)
    np.testing.assert_allclose(np.asarray(loss),
                               np.asarray(_supcon_loss_ref(feats, labels)),
                               rtol=5e-2, atol=5e-2)

    # SimCLR path (no labels / no mask): identity mask == labels = arange(bsz).
    loss_simclr = jax.block_until_ready(supcon_loss(feats))
    np.testing.assert_allclose(
        np.asarray(loss_simclr),
        np.asarray(_supcon_loss_ref(feats_bf16, jnp.arange(8, dtype=jnp.int32))),
        rtol=1e-3, atol=1e-3)

    # Case 2: explicit 128 tiles (N=192 -> n_pad=256 -> 2x2 grid): exercises
    # the online LSE across column tiles + N/D padding, once with the
    # VMEM-resident contrast features and once with the streamed fallback.
    feats2, labels2 = make_inputs(k2, 96, 2, 48, 10)
    feats2_bf16 = feats2.astype(jnp.bfloat16).astype(jnp.float32)
    ref2 = np.asarray(_supcon_loss_ref(feats2_bf16, labels2))
    loss2 = jax.block_until_ready(
        supcon_loss(feats2, labels=labels2, block_m=128, block_n=128))
    np.testing.assert_allclose(np.asarray(loss2), ref2, rtol=1e-3, atol=1e-3)
    loss2_streamed = jax.block_until_ready(
        supcon_loss(feats2, labels=labels2, block_m=128, block_n=128,
                    resident=False))
    np.testing.assert_allclose(np.asarray(loss2_streamed), ref2,
                               rtol=1e-3, atol=1e-3)

    # Case 3: default (MXU-sized) tiles with decoupled block_m != block_n
    # (N=320 -> n_pad=512, block_m=128, block_n=256 -> grid (4, 2)); checks
    # the global-index self mask on off-diagonal tiles and the auto config.
    feats3, labels3 = make_inputs(k3, 160, 2, 40, 10)
    feats3_bf16 = feats3.astype(jnp.bfloat16).astype(jnp.float32)
    loss3 = jax.block_until_ready(supcon_loss(feats3, labels=labels3))
    np.testing.assert_allclose(np.asarray(loss3),
                               np.asarray(_supcon_loss_ref(feats3_bf16, labels3)),
                               rtol=1e-3, atol=1e-3)
    np.testing.assert_allclose(np.asarray(loss3),
                               np.asarray(_supcon_loss_ref(feats3, labels3)),
                               rtol=5e-2, atol=5e-2)

    print("KERNEL_OK")
</pallas_src>

<mosaic_0001>
module attributes {stable_mosaic.version = 11 : i64} {
  func.func @_supcon_kernel(%arg0: i32, %arg1: i32, %arg2: memref<128x1xf32, #tpu.memory_space<vmem>>, %arg3: memref<128x1xi32, #tpu.memory_space<vmem>>, %arg4: memref<1x128xi32, #tpu.memory_space<vmem>>, %arg5: memref<128x128xbf16, #tpu.memory_space<vmem>>, %arg6: memref<128x1xf32, #tpu.memory_space<vmem>>, %arg7: memref<128x1xf32, #tpu.memory_space<vmem>>, %arg8: memref<128x1xf32, #tpu.memory_space<vmem>>, %arg9: memref<128x1xf32, #tpu.memory_space<vmem>>) attributes {dimension_semantics = [#tpu.dimension_semantics<parallel>, #tpu.dimension_semantics<arbitrary>], iteration_bounds = array<i64: 1, 1>, scalar_prefetch = 0 : i64, scratch_operands = 3 : i64, tpu.core_type = #tpu.core_type<tc>, window_params = [{transform_indices = @transform_0, window_bounds = array<i64: 128, 1>}, {transform_indices = @transform_1, window_bounds = array<i64: 128, 1>}, {pipeline_mode = #tpu.pipeline_mode<synchronous>, transform_indices = @transform_2, window_bounds = array<i64: 1, 128>}, {pipeline_mode = #tpu.pipeline_mode<synchronous>, transform_indices = @transform_3, window_bounds = array<i64: 128, 128>}, {transform_indices = @transform_4, window_bounds = array<i64: 128, 1>}]} {
    %c0_i32 = arith.constant 0 : i32
    %0 = arith.cmpi eq, %arg1, %c0_i32 : i32
    %1 = arith.extui %0 : i1 to i32
    %c0_i32_0 = arith.constant 0 : i32
    %2 = arith.cmpi ne, %1, %c0_i32_0 : i32
    scf.if %2 {
      %cst_28 = arith.constant -1.000000e+30 : f32
      %72 = vector.broadcast %cst_28 : f32 to vector<128x1xf32>
      %c0_29 = arith.constant 0 : index
      %c0_30 = arith.constant 0 : index
      %73 = vector.load %arg7[%c0_29, %c0_30] : memref<128x1xf32, #tpu.memory_space<vmem>>, vector<128x1xf32>
      tpu.vector_store %arg7[%c0_29, %c0_30], %72 {strides = array<i32>} : memref<128x1xf32, #tpu.memory_space<vmem>>, vector<128x1xf32>,
      %cst_31 = arith.constant 0.000000e+00 : f32
      %74 = vector.broadcast %cst_31 : f32 to vector<128x1xf32>
      %c0_32 = arith.constant 0 : index
      %c0_33 = arith.constant 0 : index
      %75 = vector.load %arg8[%c0_32, %c0_33] : memref<128x1xf32, #tpu.memory_space<vmem>>, vector<128x1xf32>
      tpu.vector_store %arg8[%c0_32, %c0_33], %74 {strides = array<i32>} : memref<128x1xf32, #tpu.memory_space<vmem>>, vector<128x1xf32>,
      %cst_34 = arith.constant 0.000000e+00 : f32
      %76 = vector.broadcast %cst_34 : f32 to vector<128x1xf32>
      %c0_35 = arith.constant 0 : index
      %c0_36 = arith.constant 0 : index
      %77 = vector.load %arg9[%c0_35, %c0_36] : memref<128x1xf32, #tpu.memory_space<vmem>>, vector<128x1xf32>
      tpu.vector_store %arg9[%c0_35, %c0_36], %76 {strides = array<i32>} : memref<128x1xf32, #tpu.memory_space<vmem>>, vector<128x1xf32>,
    } else {
    }
    %c128_i32 = arith.constant 128 : i32
    %3 = arith.muli %arg0, %c128_i32 : i32
    %4 = tpu.assume_multiple %3, 128 : i32
    %5 = arith.index_cast %4 : i32 to index
    %c0 = arith.constant 0 : index
    %6 = vector.load %arg5[%5, %c0] : memref<128x128xbf16, #tpu.memory_space<vmem>>, vector<128x128xbf16>
    %c128_i32_1 = arith.constant 128 : i32
    %7 = arith.muli %arg1, %c128_i32_1 : i32
    %8 = tpu.assume_multiple %7, 128 : i32
    %9 = arith.index_cast %8 : i32 to index
    %c0_2 = arith.constant 0 : index
    %10 = vector.load %arg5[%9, %c0_2] : memref<128x128xbf16, #tpu.memory_space<vmem>>, vector<128x128xbf16>
    %cst = arith.constant dense<0.000000e+00> : vector<128x128xf32>
    %11 = tpu.matmul %6, %10, %cst {dimension_numbers = #tpu.dot_dimension_numbers<[1], [1], [0], [0], [0, 0, 1, 0], [], []>} : vector<128x128xbf16>, vector<128x128xbf16>, vector<128x128xf32> -> vector<128x128xf32>
    %cst_3 = arith.constant 14.2857141 : f32
    %12 = vector.broadcast %cst_3 : f32 to vector<128x128xf32>
    %13 = arith.mulf %11, %12 : vector<128x128xf32>
    %c128_i32_4 = arith.constant 128 : i32
    %14 = arith.muli %arg0, %c128_i32_4 : i32
    %15 = tpu.iota {dimensions = array<i32: 0>} : vector<128x1xi32>
    %16 = vector.broadcast %14 : i32 to vector<128x1xi32>
    %17 = arith.addi %16, %15 : vector<128x1xi32>
    %c128_i32_5 = arith.constant 128 : i32
    %18 = arith.muli %arg1, %c128_i32_5 : i32
    %19 = tpu.iota {dimensions = array<i32: 1>} : vector<1x128xi32>
    %20 = vector.broadcast %18 : i32 to vector<1x128xi32>
    %21 = arith.addi %20, %19 : vector<1x128xi32>
    %c16_i32 = arith.constant 16 : i32
    %22 = vector.broadcast %c16_i32 : i32 to vector<1x128xi32>
    %23 = arith.cmpi slt, %21, %22 : vector<1x128xi32>
    %24 = vector.broadcast %17 : vector<128x1xi32> to vector<128x128xi32>
    %25 = vector.broadcast %21 : vector<1x128xi32> to vector<128x128xi32>
    %26 = arith.cmpi eq, %24, %25 : vector<128x128xi32>
    %27 = arith.extui %23 : vector<1x128xi1> to vector<1x128xi32>
    %28 = arith.sitofp %27 : vector<1x128xi32> to vector<1x128xf32>
    %cst_6 = arith.constant 0.000000e+00 : f32
    %29 = vector.broadcast %cst_6 : f32 to vector<128x128xf32>
    %30 = vector.shape_cast %28 : vector<1x128xf32> to vector<1x128xf32>
    %31 = vector.broadcast %30 : vector<1x128xf32> to vector<128x128xf32>
    %32 = arith.select %26, %29, %31 : vector<128x128xi1>, vector<128x128xf32>
    %33 = arith.index_cast %arg1 : i32 to index
    %c0_7 = arith.constant 0 : index
    %34 = vector.load %arg4[%33, %c0_7] : memref<1x128xi32, #tpu.memory_space<vmem>>, vector<1x128xi32>
    %c0_8 = arith.constant 0 : index
    %c0_9 = arith.constant 0 : index
    %35 = vector.load %arg3[%c0_8, %c0_9] : memref<128x1xi32, #tpu.memory_space<vmem>>, vector<128x1xi32>
    %36 = vector.broadcast %35 : vector<128x1xi32> to vector<128x128xi32>
    %37 = vector.broadcast %34 : vector<1x128xi32> to vector<128x128xi32>
    %38 = arith.cmpi eq, %36, %37 : vector<128x128xi32>
    %39 = arith.extui %38 : vector<128x128xi1> to vector<128x128xi32>
    %40 = arith.sitofp %39 : vector<128x128xi32> to vector<128x128xf32>
    %41 = arith.mulf %40, %32 : vector<128x128xf32>
    %c0_10 = arith.constant 0 : index
    %c0_11 = arith.constant 0 : index
    %42 = vector.load %arg7[%c0_10, %c0_11] : memref<128x1xf32, #tpu.memory_space<vmem>>, vector<128x1xf32>
    %cst_12 = arith.constant -1.000000e+30 : f32
    %43 = vector.shape_cast %23 : vector<1x128xi1> to vector<1x128xi1>
    %44 = vector.broadcast %43 : vector<1x128xi1> to vector<128x128xi1>
    %45 = vector.broadcast %cst_12 : f32 to vector<128x128xf32>
    %46 = arith.select %44, %13, %45 : vector<128x128xi1>, vector<128x128xf32>
    %cst_13 = arith.constant dense<0xFF800000> : vector<128xf32>
    %47 = vector.multi_reduction <maximumf>, %46, %cst_13 [1] : vector<128x128xf32> to vector<128xf32>
    %48 = vector.shape_cast %47 : vector<128xf32> to vector<128x1xf32>
    %49 = arith.maximumf %42, %48 : vector<128x1xf32>
    %50 = arith.subf %42, %49 : vector<128x1xf32>
    %51 = math.exp %50 : vector<128x1xf32>
    %52 = vector.broadcast %49 : vector<128x1xf32> to vector<128x128xf32>
    %53 = arith.subf %13, %52 : vector<128x128xf32>
    %54 = math.exp %53 : vector<128x128xf32>
    %55 = arith.mulf %54, %32 : vector<128x128xf32>
    %c0_14 = arith.constant 0 : index
    %c0_15 = arith.constant 0 : index
    %56 = vector.load %arg8[%c0_14, %c0_15] : memref<128x1xf32, #tpu.memory_space<vmem>>, vector<128x1xf32>
    %57 = arith.mulf %51, %56 : vector<128x1xf32>
    %cst_16 = arith.constant dense<0.000000e+00> : vector<128xf32>
    %58 = vector.multi_reduction <add>, %55, %cst_16 [1] : vector<128x128xf32> to vector<128xf32>
    %59 = vector.shape_cast %58 : vector<128xf32> to vector<128x1xf32>
    %60 = arith.addf %57, %59 : vector<128x1xf32>
    %c0_17 = arith.constant 0 : index
    %c0_18 = arith.constant 0 : index
    %61 = vector.load %arg8[%c0_17, %c0_18] : memref<128x1xf32, #tpu.memory_space<vmem>>, vector<128x1xf32>
    tpu.vector_store %arg8[%c0_17, %c0_18], %60 {strides = array<i32>} : memref<128x1xf32, #tpu.memory_space<vmem>>, vector<128x1xf32>,
    %c0_19 = arith.constant 0 : index
    %c0_20 = arith.constant 0 : index
    %62 = vector.load %arg7[%c0_19, %c0_20] : memref<128x1xf32, #tpu.memory_space<vmem>>, vector<128x1xf32>
    tpu.vector_store %arg7[%c0_19, %c0_20], %49 {strides = array<i32>} : memref<128x1xf32, #tpu.memory_space<vmem>>, vector<128x1xf32>,
    %c0_21 = arith.constant 0 : index
    %c0_22 = arith.constant 0 : index
    %63 = vector.load %arg9[%c0_21, %c0_22] : memref<128x1xf32, #tpu.memory_space<vmem>>, vector<128x1xf32>
    %64 = arith.mulf %41, %13 : vector<128x128xf32>
    %cst_23 = arith.constant dense<0.000000e+00> : vector<128xf32>
    %65 = vector.multi_reduction <add>, %64, %cst_23 [1] : vector<128x128xf32> to vector<128xf32>
    %66 = vector.shape_cast %65 : vector<128xf32> to vector<128x1xf32>
    %67 = arith.addf %63, %66 : vector<128x1xf32>
    %c0_24 = arith.constant 0 : index
    %c0_25 = arith.constant 0 : index
    %68 = vector.load %arg9[%c0_24, %c0_25] : memref<128x1xf32, #tpu.memory_space<vmem>>, vector<128x1xf32>
    tpu.vector_store %arg9[%c0_24, %c0_25], %67 {strides = array<i32>} : memref<128x1xf32, #tpu.memory_space<vmem>>, vector<128x1xf32>,
    %c0_i32_26 = arith.constant 0 : i32
    %69 = arith.cmpi eq, %arg1, %c0_i32_26 : i32
    %70 = arith.extui %69 : i1 to i32
    %c0_i32_27 = arith.constant 0 : i32
    %71 = arith.cmpi ne, %70, %c0_i32_27 : i32
    scf.if %71 {
      %c0_28 = arith.constant 0 : index
      %c0_29 = arith.constant 0 : index
      %72 = vector.load %arg7[%c0_28, %c0_29] : memref<128x1xf32, #tpu.memory_space<vmem>>, vector<128x1xf32>
      %c0_30 = arith.constant 0 : index
      %c0_31 = arith.constant 0 : index
      %73 = vector.load %arg8[%c0_30, %c0_31] : memref<128x1xf32, #tpu.memory_space<vmem>>, vector<128x1xf32>
      %74 = math.log %73 : vector<128x1xf32>
      %75 = arith.addf %72, %74 : vector<128x1xf32>
      %c0_32 = arith.constant 0 : index
      %c0_33 = arith.constant 0 : index
      %76 = vector.load %arg9[%c0_32, %c0_33] : memref<128x1xf32, #tpu.memory_space<vmem>>, vector<128x1xf32>
      %c0_34 = arith.constant 0 : index
      %c0_35 = arith.constant 0 : index
      %77 = vector.load %arg2[%c0_34, %c0_35] : memref<128x1xf32, #tpu.memory_space<vmem>>, vector<128x1xf32>
      %78 = arith.mulf %76, %77 : vector<128x1xf32>
      %79 = arith.subf %78, %75 : vector<128x1xf32>
      %cst_36 = arith.constant -1.000000e+00 : f32
      %80 = vector.broadcast %cst_36 : f32 to vector<128x1xf32>
      %81 = arith.mulf %80, %79 : vector<128x1xf32>
      %c0_37 = arith.constant 0 : index
      %c0_38 = arith.constant 0 : index
      %82 = vector.load %arg6[%c0_37, %c0_38] : memref<128x1xf32, #tpu.memory_space<vmem>>, vector<128x1xf32>
      tpu.vector_store %arg6[%c0_37, %c0_38], %81 {strides = array<i32>} : memref<128x1xf32, #tpu.memory_space<vmem>>, vector<128x1xf32>,
    } else {
    }
    return
  }
  func.func @transform_0(%arg0: i32, %arg1: i32) -> (i32, i32) {
    %c0_i32 = arith.constant 0 : i32
    %c0_i32_0 = arith.constant 0 : i32
    return %arg0, %c0_i32 : i32, i32
  }
  func.func @transform_1(%arg0: i32, %arg1: i32) -> (i32, i32) {
    %c0_i32 = arith.constant 0 : i32
    %c0_i32_0 = arith.constant 0 : i32
    return %arg0, %c0_i32 : i32, i32
  }
  func.func @transform_2(%arg0: i32, %arg1: i32) -> (i32, i32) {
    %c0_i32 = arith.constant 0 : i32
    %c0_i32_0 = arith.constant 0 : i32
    %c0_i32_1 = arith.constant 0 : i32
    return %c0_i32, %c0_i32_0 : i32, i32
  }
  func.func @transform_3(%arg0: i32, %arg1: i32) -> (i32, i32) {
    %c0_i32 = arith.constant 0 : i32
    %c0_i32_0 = arith.constant 0 : i32
    %c0_i32_1 = arith.constant 0 : i32
    return %c0_i32, %c0_i32_0 : i32, i32
  }
  func.func @transform_4(%arg0: i32, %arg1: i32) -> (i32, i32) {
    %c0_i32 = arith.constant 0 : i32
    %c0_i32_0 = arith.constant 0 : i32
    return %arg0, %c0_i32 : i32, i32
  }
}

</mosaic_0001>

<bundles_post_ra>
// kernel: tpu_custom_call.1
= control target key start
LH: loop header
LB: loop body
LE: loop exit
PB: predicated region body
PF: predicated region fallthrough
CT: control target
= control target key end

     0   :  { %v1369_v1 = vmov 0   ;;  %v273_v47 = vlaneseq  ;;  %v2233_v50 = vmov 0.0   ;;  %s2228_s3 = inlined_call_operand.vmem [shape: bf16[128,128], index: 3, kind: input, shape index: {}]   ;;  %s2229_s1 = inlined_call_operand.vmem [shape: s32[128,1], index: 1, kind: input, shape index: {}]   ;;  %s2230_s2 = inlined_call_operand.vmem [shape: s32[1,128], index: 2, kind: input, shape index: {}]   ;;  %s2231_s0 = inlined_call_operand.vmem [shape: f32[128,1], index: 0, kind: input, shape index: {}]   ;;  %s2232_s4 = inlined_call_operand.vmem [shape: f32[128,1], index: 4, kind: output, shape index: {}]  }
   0x1   :  { %v1241_v0 = vld [vmem:[%s2228_s3 + $0x38] sm:$0xff]  ;;  %1269 = vset.pattern.permute.xlu0 %v1369_v1  ;;  %1270 = vset.pattern.permute.xlu1 %v1369_v1  ;;  %v347_v2 = vld [vmem:[%s2229_s1] sm:$0xff]  ;;  %v1240_v3 = vld [vmem:[%s2228_s3 + $0x30] sm:$0xff] }
   0x2   :  { %1271 = vset.pattern.permute.xlu2 %v1369_v1  ;;  %208 = vmatpush.bf16.xpose.msra.mxu0 %v1241_v0  ;;  %v348_v4 = vld [vmem:[%s2229_s1 + $0x8] sm:$0xff]  ;;  %v353_v6 = vld [vmem:[%s2229_s1 + $0x30] sm:$0xff]  ;;  %v1238_v8 = vld [vmem:[%s2228_s3 + $0x20] sm:$0xff]  ;;  %v1524_v48 = vand.u32 127, %v273_v47  ;;  %v1527_v49 = vshrl.u32 %v273_v47, 7 }
   0x3   :  { %1242 = vmatpush.bf16.xpose.msra.mxu1 %v1241_v0  ;;  %1243 = vmatpush.bf16.xpose.msra.mxu2 %v1241_v0  ;;  %v1239_v5 = vld [vmem:[%s2228_s3 + $0x28] sm:$0xff]  ;;  %v349_v7 = vld [vmem:[%s2229_s1 + $0x10] sm:$0xff]  ;;  %v350_v10 = vld [vmem:[%s2229_s1 + $0x18] sm:$0xff] }
   0x4   :  { %1244 = vmatpush.bf16.xpose.msra.mxu3 %v1241_v0  ;;  %364 = vperm.xlu0 %1269, %v347_v2   ;;  %v356_v9 = vld [vmem:[%s2229_s1 + $0x48] sm:$0xff]  ;;  %v1237_v11 = vld [vmem:[%s2228_s3 + $0x18] sm:$0xff]  ;;  %v351_v12 = vld [vmem:[%s2229_s1 + $0x20] sm:$0xff]  ;;  %vm311_vm3 = vcmp.lt.s32.totalorder %v1524_v48, 16  ;;  %vm312_vm4 = vcmp.eq.s32.totalorder %v1527_v49, %v1524_v48  ;;  %v278_v59 = vadd.s32 32, %v1527_v49  ;;  %v282_v61 = vadd.s32 64, %v1527_v49 }
   0x5   :  { %370 = vperm.xlu1 %1270, %v349_v7   ;;  %v359_v13 = vld [vmem:[%s2229_s1 + $0x60] sm:$0xff]  ;;  %v354_v14 = vld [vmem:[%s2229_s1 + $0x38] sm:$0xff]  ;;  %376 = vperm.xlu2 %1271, %v351_v12   ;;  %v1236_v15 = vld [vmem:[%s2228_s3 + $0x10] sm:$0xff]  ;;  %v1534_v51 = vsel %vm311_vm3, 1.0, %v2233_v50 }
   0x6   :  { %v352_v16 = vld [vmem:[%s2229_s1 + $0x28] sm:$0xff]  ;;  %v362_v17 = vld [vmem:[%s2229_s1 + $0x78] sm:$0xff]  ;;  %v357_v18 = vld [vmem:[%s2229_s1 + $0x50] sm:$0xff]  ;;  %v1538_v52 = vsel %vm312_vm4, 0.0, %v1534_v51  ;;  %vm316_vm6 = vcmp.eq.s32.totalorder %v278_v59, %v1524_v48  ;;  %vm320_vm8 = vcmp.eq.s32.totalorder %v282_v61, %v1524_v48 }
   0x7   :  { %v1235_v19 = vld [vmem:[%s2228_s3 + $0x8] sm:$0xff]  ;;  %v355_v20 = vld [vmem:[%s2229_s1 + $0x40] sm:$0xff]  ;;  %v358_v23 = vld [vmem:[%s2229_s1 + $0x58] sm:$0xff] }
   0x8   :  { %v360_v21 = vld [vmem:[%s2229_s1 + $0x68] sm:$0xff]  ;;  %v1234_v22 = vld [vmem:[%s2228_s3] sm:$0xff]  ;;  %v1228_v25 = vld [vmem:[%s2228_s3 + $0x10] sm:$0xff] }
   0x9   :  { %v1226_v24 = vld [vmem:[%s2228_s3] sm:$0xff]  ;;  %v1232_v27 = vld [vmem:[%s2228_s3 + $0x30] sm:$0xff]  ;;  %v1229_v29 = vld [vmem:[%s2228_s3 + $0x18] sm:$0xff] }
   0xa   :  { %209 = vmatpush.bf16.xpose.msra.mxu0 %v1240_v3  ;;  %v1230_v26 = vld [vmem:[%s2228_s3 + $0x20] sm:$0xff]  ;;  %v361_v28 = vld [vmem:[%s2229_s1 + $0x70] sm:$0xff]  ;;  %v1227_v30 = vld [vmem:[%s2228_s3 + $0x8] sm:$0xff] }
   0xb   :  { %1245 = vmatpush.bf16.xpose.msra.mxu1 %v1240_v3  ;;  %1246 = vmatpush.bf16.xpose.msra.mxu2 %v1240_v3  ;;  %v1231_v31 = vld [vmem:[%s2228_s3 + $0x28] sm:$0xff]  ;;  %v1233_v32 = vld [vmem:[%s2228_s3 + $0x38] sm:$0xff]  ;;  %v1508_v42 = vld [vmem:[%s2230_s2] ss:$0 sm:$0xff] }
   0xc   :  { %1247 = vmatpush.bf16.xpose.msra.mxu3 %v1240_v3  ;;  %367 = vperm.xlu0 %1269, %v348_v4  }
   0xd   :  { %373 = vperm.xlu1 %1270, %v350_v10   ;;  %379 = vperm.xlu2 %1271, %v352_v16   ;;  %v279_v10 = vadd.s32 40, %v1527_v49 }
   0xf   :  { %vm317_vm10 = vcmp.eq.s32.totalorder %v279_v10, %v1524_v48 }
  0x12   :  { %210 = vmatpush.bf16.xpose.msra.mxu0 %v1239_v5 }
  0x13   :  { %1248 = vmatpush.bf16.xpose.msra.mxu1 %v1239_v5  ;;  %1249 = vmatpush.bf16.xpose.msra.mxu2 %v1239_v5 }
  0x14   :  { %1250 = vmatpush.bf16.xpose.msra.mxu3 %v1239_v5  ;;  %382 = vperm.xlu0 %1269, %v353_v6   ;;  %v1570_v6 = vsel %vm316_vm6, 0.0, %v1534_v51  ;;  %vm21_vm6 = vcmask 7168  }
  0x15   :  { %385 = vperm.xlu1 %1270, %v354_v14   ;;  %388 = vperm.xlu2 %1271, %v355_v20   ;;  %38 = vst.msk [vmem:[#allocation3] sm:$0xff] %vm21_vm6, %v2233_v50 }
  0x16   :  { %39 = vst.msk [vmem:[#allocation3 + $0x8] sm:$0xff] %vm21_vm6, %v2233_v50 }
  0x17   :  { %40 = vst.msk [vmem:[#allocation3 + $0x10] sm:$0xff] %vm21_vm6, %v2233_v50 }
  0x18   :  { %41 = vst.msk [vmem:[#allocation3 + $0x18] sm:$0xff] %vm21_vm6, %v2233_v50 }
  0x19   :  { %42 = vst.msk [vmem:[#allocation3 + $0x20] sm:$0xff] %vm21_vm6, %v2233_v50 }
  0x1a   :  { %211 = vmatpush.bf16.xpose.msra.mxu0 %v1238_v8  ;;  %43 = vst.msk [vmem:[#allocation3 + $0x28] sm:$0xff] %vm21_vm6, %v2233_v50 }
  0x1b   :  { %1251 = vmatpush.bf16.xpose.msra.mxu1 %v1238_v8  ;;  %1252 = vmatpush.bf16.xpose.msra.mxu2 %v1238_v8  ;;  %44 = vst.msk [vmem:[#allocation3 + $0x30] sm:$0xff] %vm21_vm6, %v2233_v50 }
  0x1c   :  { %1253 = vmatpush.bf16.xpose.msra.mxu3 %v1238_v8  ;;  %391 = vperm.xlu0 %1269, %v356_v9   ;;  %v1574_v8 = vsel %vm320_vm8, 0.0, %v1534_v51  ;;  %45 = vst.msk [vmem:[#allocation3 + $0x38] sm:$0xff] %vm21_vm6, %v2233_v50 }
  0x1d   :  { %394 = vperm.xlu1 %1270, %v357_v18   ;;  %397 = vperm.xlu2 %1271, %v358_v23   ;;  %46 = vst.msk [vmem:[#allocation3 + $0x40] sm:$0xff] %vm21_vm6, %v2233_v50 }
  0x1e   :  { %47 = vst.msk [vmem:[#allocation3 + $0x48] sm:$0xff] %vm21_vm6, %v2233_v50 }
  0x1f   :  { %48 = vst.msk [vmem:[#allocation3 + $0x50] sm:$0xff] %vm21_vm6, %v2233_v50 }
  0x20   :  { %49 = vst.msk [vmem:[#allocation3 + $0x58] sm:$0xff] %vm21_vm6, %v2233_v50 }
  0x21   :  { %50 = vst.msk [vmem:[#allocation3 + $0x60] sm:$0xff] %vm21_vm6, %v2233_v50 }
  0x22   :  { %212 = vmatpush.bf16.xpose.msra.mxu0 %v1237_v11  ;;  %51 = vst.msk [vmem:[#allocation3 + $0x68] sm:$0xff] %vm21_vm6, %v2233_v50 }
  0x23   :  { %1254 = vmatpush.bf16.xpose.msra.mxu1 %v1237_v11  ;;  %1255 = vmatpush.bf16.xpose.msra.mxu2 %v1237_v11  ;;  %52 = vst.msk [vmem:[#allocation3 + $0x70] sm:$0xff] %vm21_vm6, %v2233_v50 }
  0x24   :  { %1256 = vmatpush.bf16.xpose.msra.mxu3 %v1237_v11  ;;  %400 = vperm.xlu0 %1269, %v359_v13   ;;  %v275_v13 = vadd.s32 8, %v1527_v49  ;;  %53 = vst.msk [vmem:[#allocation3 + $0x78] sm:$0xff] %vm21_vm6, %v2233_v50 }
  0x25   :  { %403 = vperm.xlu1 %1270, %v360_v21   ;;  %406 = vperm.xlu2 %1271, %v361_v28   ;;  %54 = vst.msk [vmem:[#allocation4] sm:$0xff] %vm21_vm6, %v2233_v50 }
  0x26   :  { %vm313_vm12 = vcmp.eq.s32.totalorder %v275_v13, %v1524_v48  ;;  %55 = vst.msk [vmem:[#allocation4 + $0x8] sm:$0xff] %vm21_vm6, %v2233_v50 }
  0x27   :  { %56 = vst.msk [vmem:[#allocation4 + $0x10] sm:$0xff] %vm21_vm6, %v2233_v50 }
  0x28   :  { %57 = vst.msk [vmem:[#allocation4 + $0x18] sm:$0xff] %vm21_vm6, %v2233_v50 }
  0x29   :  { %58 = vst.msk [vmem:[#allocation4 + $0x20] sm:$0xff] %vm21_vm6, %v2233_v50 }
  0x2a   :  { %213 = vmatpush.bf16.xpose.msra.mxu0 %v1236_v15  ;;  %59 = vst.msk [vmem:[#allocation4 + $0x28] sm:$0xff] %vm21_vm6, %v2233_v50 }
  0x2b   :  { %1257 = vmatpush.bf16.xpose.msra.mxu1 %v1236_v15  ;;  %1258 = vmatpush.bf16.xpose.msra.mxu2 %v1236_v15  ;;  %60 = vst.msk [vmem:[#allocation4 + $0x30] sm:$0xff] %vm21_vm6, %v2233_v50 }
  0x2c   :  { %1259 = vmatpush.bf16.xpose.msra.mxu3 %v1236_v15  ;;  %409 = vperm.xlu0 %1269, %v362_v17   ;;  %61 = vst.msk [vmem:[#allocation4 + $0x38] sm:$0xff] %vm21_vm6, %v2233_v50 }
  0x2d   :  { %62 = vst.msk [vmem:[#allocation4 + $0x40] sm:$0xff] %vm21_vm6, %v2233_v50 }
  0x2e   :  { %63 = vst.msk [vmem:[#allocation4 + $0x48] sm:$0xff] %vm21_vm6, %v2233_v50 }
  0x2f   :  { %64 = vst.msk [vmem:[#allocation4 + $0x50] sm:$0xff] %vm21_vm6, %v2233_v50 }
  0x30   :  { %65 = vst.msk [vmem:[#allocation4 + $0x58] sm:$0xff] %vm21_vm6, %v2233_v50 }
  0x31   :  { %66 = vst.msk [vmem:[#allocation4 + $0x60] sm:$0xff] %vm21_vm6, %v2233_v50 }
  0x32   :  { %214 = vmatpush.bf16.xpose.msra.mxu0 %v1235_v19  ;;  %67 = vst.msk [vmem:[#allocation4 + $0x68] sm:$0xff] %vm21_vm6, %v2233_v50 }
  0x33   :  { %1260 = vmatpush.bf16.xpose.msra.mxu1 %v1235_v19  ;;  %1261 = vmatpush.bf16.xpose.msra.mxu2 %v1235_v19  ;;  %68 = vst.msk [vmem:[#allocation4 + $0x70] sm:$0xff] %vm21_vm6, %v2233_v50 }
  0x34   :  { %1262 = vmatpush.bf16.xpose.msra.mxu3 %v1235_v19  ;;  %v1592_v19 = vsel %vm317_vm10, 0.0, %v1534_v51  ;;  %69 = vst.msk [vmem:[#allocation4 + $0x78] sm:$0xff] %vm21_vm6, %v2233_v50 }
  0x3a   :  { %215 = vmatpush.bf16.xpose.msra.mxu0 %v1234_v22 }
  0x3b   :  { %1263 = vmatpush.bf16.xpose.msra.mxu1 %v1234_v22  ;;  %1264 = vmatpush.bf16.xpose.msra.mxu2 %v1234_v22 }
  0x3c   :  { %1265 = vmatpush.bf16.xpose.msra.mxu3 %v1234_v22  ;;  %v1599_v22 = vsel %vm313_vm12, 0.0, %v1534_v51 }
  0x41   :  { %216 = vmatmul.bf16.vlgmr.msra.gmra.mxu0 %v1226_v24 }
  0x42   :  { %226 = vmatmul.bf16.vlgmr.msra.gmra.mxu1 %v1228_v25  ;;  %236 = vmatmul.bf16.vlgmr.msra.gmra.mxu2 %v1230_v26  ;;  %v283_v26 = vadd.s32 72, %v1527_v49 }
  0x43   :  { %246 = vmatmul.bf16.vlgmr.msra.gmra.mxu3 %v1232_v27 }
  0x44   :  { %vm321_vm14 = vcmp.eq.s32.totalorder %v283_v26, %v1524_v48 }
  0x51   :  { %221 = vmatmul.bf16.gmra.mxu0 %v1227_v30 }
  0x52   :  { %231 = vmatmul.bf16.gmra.mxu1 %v1229_v29  ;;  %241 = vmatmul.bf16.gmra.mxu2 %v1231_v31 }
  0x53   :  { %251 = vmatmul.bf16.gmra.mxu3 %v1233_v32 }
  0x5f   :  { %v377_v34 = vpop.permute.xlu2 %376 }
  0x60   :  { %vm416_vm7 = vcmp.eq.s32.totalorder %v377_v34, %v1508_v42 }
  0x61   :  { %v1214_v7 = vsel %vm416_vm7, 1.0, %v2233_v50 }
  0x62   :  { %v464_v12 = vmul.f32 %v1214_v7, %v1570_v6 }
  0x67   :  { %v1495_v36 = vpop.permute.xlu2 %379 }
  0x68   :  { %vm417_vm11 = vcmp.eq.s32.totalorder %v1495_v36, %v1508_v42  ;;  %v280_v36 = vadd.s32 48, %v1527_v49 }
  0x69   :  { %v1215_v20 = vsel %vm417_vm11, 1.0, %v2233_v50 }
  0x6a   :  { %v465_v25 = vmul.f32 %v1215_v20, %v1592_v19  ;;  %vm318_vm4 = vcmp.eq.s32.totalorder %v280_v36, %v1524_v48 }
  0x6b   :  { %v1640_v61 = vsel %vm318_vm4, 0.0, %v1534_v51 }
  0x6f   :  { %v389_v39 = vpop.permute.xlu2 %388 }
  0x70   :  { %vm420_vm9 = vcmp.eq.s32.totalorder %v389_v39, %v1508_v42 }
  0x71   :  { %v1218_v9 = vsel %vm420_vm9, 1.0, %v2233_v50 }
  0x72   :  { %v468_v14 = vmul.f32 %v1218_v9, %v1574_v8  ;;  %v281_v9 = vadd.s32 56, %v1527_v49 }
  0x74   :  { %vm319_vm9 = vcmp.eq.s32.totalorder %v281_v9, %v1524_v48 }
  0x76   :  { %v365_v33 = vpop.permute.xlu0 %364 }
  0x77   :  { %v1499_v38 = vpop.permute.xlu1 %370  ;;  %v1510_v43 = vpop.permute.xlu2 %397  ;;  %vm412_vm5 = vcmp.eq.s32.totalorder %v365_v33, %v1508_v42  ;;  %v1616_v33 = vsel %vm321_vm14, 0.0, %v1534_v51 }
  0x78   :  { %vm423_vm0 = vcmp.eq.s32.totalorder %v1510_v43, %v1508_v42  ;;  %v1210_v53 = vsel %vm412_vm5, 1.0, %v2233_v50  ;;  %vm414_vm8 = vcmp.eq.s32.totalorder %v1499_v38, %v1508_v42 }
  0x79   :  { %v460_v54 = vmul.f32 %v1210_v53, %v1538_v52  ;;  %v1212_v38 = vsel %vm414_vm8, 1.0, %v2233_v50 }
  0x7e   :  { %v1493_v35 = vpop.permute.xlu0 %367 }
  0x7f   :  { %v1503_v41 = vpop.permute.xlu1 %373  ;;  %vm413_vm13 = vcmp.eq.s32.totalorder %v1493_v35, %v1508_v42 }
  0x80   :  { %v1211_v23 = vsel %vm413_vm13, 1.0, %v2233_v50  ;;  %vm415_vm12 = vcmp.eq.s32.totalorder %v1503_v41, %v1508_v42 }
  0x81   :  { %v461_v27 = vmul.f32 %v1211_v23, %v1599_v22 }
  0x86   :  { %v1497_v37 = vpop.permute.xlu0 %382 }
  0x87   :  { %v1518_v45 = vpop.permute.xlu1 %385  ;;  %vm418_vm5 = vcmp.eq.s32.totalorder %v1497_v37, %v1508_v42 }
  0x88   :  { %v1216_v37 = vsel %vm418_vm5, 1.0, %v2233_v50  ;;  %vm419_vm10 = vcmp.eq.s32.totalorder %v1518_v45, %v1508_v42  ;;  %v1681_v45 = vsel %vm319_vm9, 0.0, %v1534_v51 }
  0x89   :  { %v1217_v20 = vsel %vm419_vm10, 1.0, %v2233_v50 }
  0x8e   :  { %v1501_v40 = vpop.permute.xlu0 %391 }
  0x8f   :  { %v1520_v46 = vpop.permute.xlu1 %394  ;;  %vm421_vm15 = vcmp.eq.s32.totalorder %v1501_v40, %v1508_v42 }
  0x90   :  { %vm422_vm2 = vcmp.eq.s32.totalorder %v1520_v46, %v1508_v42  ;;  %v1219_v34 = vsel %vm421_vm15, 1.0, %v2233_v50 }
  0x91   :  { %v469_v40 = vmul.f32 %v1219_v34, %v1616_v33 }
  0x96   :  { %v1512_v44 = vpop.permute.xlu0 %400 }
  0x97   :  { %vm424_vm1 = vcmp.eq.s32.totalorder %v1512_v44, %v1508_v42 }
  0xbe   :  { %v217_v55 = vpop.f32.mrf.mxu0 }
  0xbf   :  { %v1542_v56 = vmul.f32 14.285714, %v217_v55  ;;  %v227_v60 = vpop.f32.mrf.mxu1 }
  0xc0   :  { %v1550_v62 = vmul.f32 14.285714, %v227_v60 }
  0xc1   :  { %v493_v57 = vsel %vm311_vm3, %v1542_v56, -1e+30  ;;  %v878_v58 = vmul.f32 %v460_v54, %v1542_v56 }
  0xc2   :  { %509 = vmax.xlane.f32.xlu1 %v493_v57  ;;  %v497_v3 = vsel %vm311_vm3, %v1550_v62, -1e+30  ;;  %v882_v18 = vmul.f32 %v464_v12, %v1550_v62  ;;  %v1371_v12 = vmov -1e+30  }
  0xc3   :  { %894 = vadd.xlane.f32.xlu2 %v878_v58  ;;  %22 = vst.msk [vmem:[#allocation2] sm:$0xff] %vm21_vm6, %v1371_v12 }
  0xc4   :  { %23 = vst.msk [vmem:[#allocation2 + $0x8] sm:$0xff] %vm21_vm6, %v1371_v12 }
  0xc5   :  { %v237_v63 = vpop.f32.mrf.mxu2  ;;  %24 = vst.msk [vmem:[#allocation2 + $0x10] sm:$0xff] %vm21_vm6, %v1371_v12 }
  0xc6   :  { %v247_v0 = vpop.f32.mrf.mxu3  ;;  %v1554_v1 = vmul.f32 14.285714, %v237_v63  ;;  %v219_v11 = vpop.f32.mrf.mxu0  ;;  %25 = vst.msk [vmem:[#allocation2 + $0x18] sm:$0xff] %vm21_vm6, %v1371_v12 }
  0xc7   :  { %v1556_v2 = vmul.f32 14.285714, %v247_v0  ;;  %v1581_v15 = vmul.f32 14.285714, %v219_v11  ;;  %v229_v17 = vpop.f32.mrf.mxu1  ;;  %26 = vst.msk [vmem:[#allocation2 + $0x20] sm:$0xff] %vm21_vm6, %v1371_v12 }
  0xc8   :  { %v501_v5 = vsel %vm311_vm3, %v1554_v1, -1e+30  ;;  %v886_v16 = vmul.f32 %v468_v14, %v1554_v1  ;;  %v1602_v24 = vmul.f32 14.285714, %v229_v17  ;;  %27 = vst.msk [vmem:[#allocation2 + $0x28] sm:$0xff] %vm21_vm6, %v1371_v12 }
  0xc9   :  { %v505_v4 = vsel %vm311_vm3, %v1556_v2, -1e+30  ;;  %v494_v21 = vsel %vm311_vm3, %v1581_v15, -1e+30  ;;  %v879_v30 = vmul.f32 %v461_v27, %v1581_v15  ;;  %28 = vst.msk [vmem:[#allocation2 + $0x30] sm:$0xff] %vm21_vm6, %v1371_v12  ;;  %v467_v27 = vmul.f32 %v1217_v20, %v1681_v45 }
  0xca   :  { %533 = vmax.xlane.f32.xlu0 %v505_v4  ;;  %517 = vmax.xlane.f32.xlu1 %v497_v3  ;;  %v883_v28 = vmul.f32 %v465_v25, %v1602_v24  ;;  %v498_v32 = vsel %vm311_vm3, %v1602_v24, -1e+30  ;;  %v466_v3 = vmul.f32 %v1216_v37, %v1640_v61  ;;  %v277_v25 = vadd.s32 24, %v1527_v49  ;;  %29 = vst.msk [vmem:[#allocation2 + $0x38] sm:$0xff] %vm21_vm6, %v1371_v12  ;;  %v1793_v37 = vpop.permute.xlu2 %406 }
  0xcb   :  { %525 = vmax.xlane.f32.xlu2 %v501_v5  ;;  %v276_v5 = vadd.s32 16, %v1527_v49  ;;  %30 = vst.msk [vmem:[#allocation2 + $0x40] sm:$0xff] %vm21_vm6, %v1371_v12 }
  0xcc   :  { %31 = vst.msk [vmem:[#allocation2 + $0x48] sm:$0xff] %vm21_vm6, %v1371_v12  ;;  %vm315_vm11 = vcmp.eq.s32.totalorder %v277_v25, %v1524_v48 }
  0xcd   :  { %v239_v29 = vpop.f32.mrf.mxu2  ;;  %vm314_vm7 = vcmp.eq.s32.totalorder %v276_v5, %v1524_v48  ;;  %32 = vst.msk [vmem:[#allocation2 + $0x50] sm:$0xff] %vm21_vm6, %v1371_v12 }
  0xce   :  { %v249_v31 = vpop.f32.mrf.mxu3  ;;  %v1619_v35 = vmul.f32 14.285714, %v239_v29  ;;  %v222_v53 = vpop.f32.mrf.mxu0  ;;  %33 = vst.msk [vmem:[#allocation2 + $0x58] sm:$0xff] %vm21_vm6, %v1371_v12 }
  0xcf   :  { %v1622_v39 = vmul.f32 14.285714, %v249_v31  ;;  %v232_v57 = vpop.f32.mrf.mxu1  ;;  %v1635_v59 = vmul.f32 14.285714, %v222_v53  ;;  %34 = vst.msk [vmem:[#allocation2 + $0x60] sm:$0xff] %vm21_vm6, %v1371_v12  ;;  %v1707_v31 = vsel %vm315_vm11, 0.0, %v1534_v51 }
  0xd0   :  { %v502_v47 = vsel %vm311_vm3, %v1619_v35, -1e+30  ;;  %v887_v55 = vmul.f32 %v469_v40, %v1619_v35  ;;  %v1643_v63 = vmul.f32 14.285714, %v232_v57  ;;  %35 = vst.msk [vmem:[#allocation2 + $0x68] sm:$0xff] %vm21_vm6, %v1371_v12 }
  0xd1   :  { %v506_v54 = vsel %vm311_vm3, %v1622_v39, -1e+30  ;;  %v495_v0 = vsel %vm311_vm3, %v1635_v59, -1e+30  ;;  %36 = vst.msk [vmem:[#allocation2 + $0x70] sm:$0xff] %vm21_vm6, %v1371_v12 }
  0xd2   :  { %910 = vadd.xlane.f32.xlu0 %v886_v16  ;;  %902 = vadd.xlane.f32.xlu1 %v882_v18  ;;  %v884_v7 = vmul.f32 %v466_v3, %v1643_v63  ;;  %v1669_v16 = vsel %vm314_vm7, 0.0, %v1534_v51  ;;  %v499_v17 = vsel %vm311_vm3, %v1643_v63, -1e+30  ;;  %37 = vst.msk [vmem:[#allocation2 + $0x78] sm:$0xff] %vm21_vm6, %v1371_v12  ;;  %v1797_v3 = vpop.permute.xlu0 %409 }
  0xd3   :  { %511 = vmax.xlane.f32.xlu2 %v494_v21  ;;  %v462_v23 = vmul.f32 %v1212_v38, %v1669_v16  ;;  %v1810_v38 = vld [vmem:[#allocation2 + $0x20] sm:$0xff] }
  0xd5   :  { %v242_v58 = vpop.f32.mrf.mxu2  ;;  %v880_v29 = vmul.f32 %v462_v23, %v1635_v59 }
  0xd6   :  { %v1637_v60 = vmul.f32 14.285714, %v242_v58  ;;  %v252_v11 = vpop.f32.mrf.mxu3  ;;  %v224_v26 = vpop.f32.mrf.mxu0  ;;  %v1808_v12 = vld [vmem:[#allocation2 + $0x60] sm:$0xff] }
  0xd7   :  { %v234_v10 = vpop.f32.mrf.mxu1  ;;  %v1665_v14 = vmul.f32 14.285714, %v252_v11  ;;  %v1791_v58 = vpop.permute.xlu1 %403 }
  0xd8   :  { %v503_v4 = vsel %vm311_vm3, %v1637_v60, -1e+30  ;;  %v1659_v13 = vmul.f32 14.285714, %v234_v10  ;;  %v1907_v11 = vld [vmem:[#allocation2 + $0x70] sm:$0xff]  ;;  %vm425_vm7 = vcmp.eq.s32.totalorder %v1791_v58, %v1508_v42 }
  0xd9   :  { %v507_v18 = vsel %vm311_vm3, %v1665_v14, -1e+30  ;;  %2261 = vst [vmem:[#allocation13_spill] sm:$0xff] %v1907_v11 }
  0xda   :  { %904 = vadd.xlane.f32.xlu0 %v883_v28  ;;  %896 = vadd.xlane.f32.xlu1 %v879_v30  ;;  %v500_v21 = vsel %vm311_vm3, %v1659_v13, -1e+30  ;;  %v1695_v28 = vmul.f32 14.285714, %v224_v26  ;;  %v885_v30 = vmul.f32 %v467_v27, %v1659_v13  ;;  %v868_v26 = vld [vmem:[#allocation4 + $0x30] sm:$0xff] }
  0xdb   :  { %519 = vmax.xlane.f32.xlu2 %v498_v32  ;;  %v1213_v32 = vsel %vm415_vm12, 1.0, %v2233_v50 }
  0xdc   :  { %v496_v41 = vsel %vm311_vm3, %v1695_v28, -1e+30  ;;  %v463_v36 = vmul.f32 %v1213_v32, %v1707_v31  ;;  %v870_v32 = vld [vmem:[#allocation4 + $0x40] sm:$0xff] }
  0xde   :  { %v254_v34 = vpop.f32.mrf.mxu3  ;;  %v881_v53 = vmul.f32 %v463_v36, %v1695_v28  ;;  %v1838_v36 = vld [vmem:[#allocation2 + $0x8] sm:$0xff] }
  0xdf   :  { %v1720_v40 = vmul.f32 14.285714, %v254_v34 }
  0xe2   :  { %527 = vmax.xlane.f32.xlu0 %v502_v47  ;;  %535 = vmax.xlane.f32.xlu1 %v506_v54  ;;  %v508_v47 = vsel %vm311_vm3, %v1720_v40, -1e+30  ;;  %v244_v54 = vpop.f32.mrf.mxu2 }
  0xe3   :  { %912 = vadd.xlane.f32.xlu2 %v887_v55  ;;  %v1746_v55 = vmul.f32 14.285714, %v244_v54 }
  0xe5   :  { %v504_v57 = vsel %vm311_vm3, %v1746_v55, -1e+30 }
  0xea   :  { %513 = vmax.xlane.f32.xlu0 %v495_v0  ;;  %529 = vmax.xlane.f32.xlu1 %v503_v4  ;;  %v1795_v0 = vld [vmem:[#allocation2] sm:$0xff] }
  0xeb   :  { %906 = vadd.xlane.f32.xlu2 %v884_v7  ;;  %v862_v4 = vld [vmem:[#allocation4] sm:$0xff] }
  0xf2   :  { %521 = vmax.xlane.f32.xlu0 %v499_v17  ;;  %523 = vmax.xlane.f32.xlu1 %v500_v21 }
  0xf3   :  { %537 = vmax.xlane.f32.xlu2 %v507_v18  ;;  %v1812_v18 = vld [vmem:[#allocation2 + $0x40] sm:$0xff] }
  0xfa   :  { %898 = vadd.xlane.f32.xlu0 %v880_v29  ;;  %908 = vadd.xlane.f32.xlu1 %v885_v30 }
  0xfb   :  { %515 = vmax.xlane.f32.xlu2 %v496_v41  ;;  %v866_v41 = vld [vmem:[#allocation4 + $0x20] sm:$0xff] }
 0x102   :  { %539 = vmax.xlane.f32.xlu0 %v508_v47 }
 0x103   :  { %900 = vadd.xlane.f32.xlu2 %v881_v53 }
 0x10b   :  { %531 = vmax.xlane.f32.xlu2 %v504_v57 }
 0x135   :  { %v510_v5 = vpop.xlane.xlu1 %509 }
 0x136   :  { %v1800_v7 = vmax.f32 %v1795_v0, %v510_v5  ;;  %v895_v9 = vpop.xlane.xlu2 %894 }
 0x137   :  { %v926_v10 = vadd.f32 %v895_v9, %v862_v4  ;;  %v867_v9 = vld [vmem:[#allocation4 + $0x28] sm:$0xff] }
 0x138   :  { %846 = vst.msk [vmem:[#allocation2] sm:$0xff] %vm21_vm6, %v1800_v7  ;;  %607 = vperm.xlu1 %1270, %v1800_v7  }
 0x139   :  { %942 = vst.msk [vmem:[#allocation4] sm:$0xff] %vm21_vm6, %v926_v10  ;;  %v863_v10 = vld [vmem:[#allocation4 + $0x8] sm:$0xff] }
 0x13d   :  { %v534_v17 = vpop.xlane.xlu0 %533  ;;  %v518_v21 = vpop.xlane.xlu1 %517 }
 0x13e   :  { %v1815_v20 = vmax.f32 %v1808_v12, %v534_v17  ;;  %v1818_v23 = vmax.f32 %v1810_v38, %v518_v21  ;;  %v526_v25 = vpop.xlane.xlu2 %525  ;;  %v1850_v21 = vld [vmem:[#allocation2 + $0x28] sm:$0xff] }
 0x13f   :  { %v1825_v27 = vmax.f32 %v1812_v18, %v526_v25 }
 0x140   :  { %858 = vst.msk [vmem:[#allocation2 + $0x60] sm:$0xff] %vm21_vm6, %v1815_v20  ;;  %627 = vperm.xlu0 %1269, %v1818_v23   ;;  %667 = vperm.xlu1 %1270, %v1815_v20  }
 0x141   :  { %850 = vst.msk [vmem:[#allocation2 + $0x20] sm:$0xff] %vm21_vm6, %v1818_v23  ;;  %647 = vperm.xlu2 %1271, %v1825_v27  }
 0x142   :  { %854 = vst.msk [vmem:[#allocation2 + $0x40] sm:$0xff] %vm21_vm6, %v1825_v27 }
 0x145   :  { %v911_v34 = vpop.xlane.xlu0 %910  ;;  %v903_v53 = vpop.xlane.xlu1 %902 }
 0x146   :  { %v934_v47 = vadd.f32 %v911_v34, %v870_v32  ;;  %v930_v54 = vadd.f32 %v903_v53, %v866_v41  ;;  %v512_v57 = vpop.xlane.xlu2 %511 }
 0x147   :  { %v1842_v4 = vmax.f32 %v1838_v36, %v512_v57  ;;  %v1864_v57 = vld [vmem:[#allocation2 + $0x68] sm:$0xff] }
 0x148   :  { %950 = vst.msk [vmem:[#allocation4 + $0x40] sm:$0xff] %vm21_vm6, %v934_v47 }
 0x149   :  { %946 = vst.msk [vmem:[#allocation4 + $0x20] sm:$0xff] %vm21_vm6, %v930_v54  ;;  %612 = vperm.xlu2 %1271, %v1842_v4   ;;  %v1862_v54 = vld [vmem:[#allocation2 + $0x48] sm:$0xff] }
 0x14a   :  { %847 = vst.msk [vmem:[#allocation2 + $0x8] sm:$0xff] %vm21_vm6, %v1842_v4 }
 0x14b   :  { %2253 = vst [vmem:[#allocation5_spill] sm:$0xff] %v1864_v57 }
 0x14d   :  { %v905_v17 = vpop.xlane.xlu0 %904  ;;  %v897_v32 = vpop.xlane.xlu1 %896 }
 0x14e   :  { %v931_v25 = vadd.f32 %v905_v17, %v867_v9  ;;  %v927_v41 = vadd.f32 %v897_v32, %v863_v10  ;;  %v520_v34 = vpop.xlane.xlu2 %519  ;;  %v871_v10 = vld [vmem:[#allocation4 + $0x48] sm:$0xff] }
 0x14f   :  { %v1854_v47 = vmax.f32 %v1850_v21, %v520_v34 }
 0x150   :  { %947 = vst.msk [vmem:[#allocation4 + $0x28] sm:$0xff] %vm21_vm6, %v931_v25 }
 0x151   :  { %943 = vst.msk [vmem:[#allocation4 + $0x8] sm:$0xff] %vm21_vm6, %v927_v41  ;;  %632 = vperm.xlu2 %1271, %v1854_v47  }
 0x152   :  { %851 = vst.msk [vmem:[#allocation2 + $0x28] sm:$0xff] %vm21_vm6, %v1854_v47 }
 0x155   :  { %v528_v9 = vpop.xlane.xlu0 %527  ;;  %v536_v25 = vpop.xlane.xlu1 %535 }
 0x156   :  { %v1867_v17 = vmax.f32 %v1862_v54, %v528_v9  ;;  %v1870_v32 = vmax.f32 %v1864_v57, %v536_v25  ;;  %v913_v41 = vpop.xlane.xlu2 %912  ;;  %v1883_v9 = vld [vmem:[#allocation2 + $0x10] sm:$0xff] }
 0x157   :  { %v935_v5 = vadd.f32 %v913_v41, %v871_v10  ;;  %2255 = vst [vmem:[#allocation7_spill] sm:$0xff] %v1883_v9  ;;  %v1885_v25 = vld [vmem:[#allocation2 + $0x50] sm:$0xff] }
 0x158   :  { %2254 = vst [vmem:[#allocation6_spill] sm:$0xff] %v1870_v32  ;;  %652 = vperm.xlu1 %1270, %v1867_v17   ;;  %672 = vperm.xlu0 %1269, %v1870_v32  }
 0x159   :  { %855 = vst.msk [vmem:[#allocation2 + $0x48] sm:$0xff] %vm21_vm6, %v1867_v17 }
 0x15a   :  { %859 = vst.msk [vmem:[#allocation2 + $0x68] sm:$0xff] %vm21_vm6, %v1870_v32 }
 0x15b   :  { %951 = vst.msk [vmem:[#allocation4 + $0x48] sm:$0xff] %vm21_vm6, %v935_v5 }
 0x15c   :  { %2256 = vst [vmem:[#allocation8_spill] sm:$0xff] %v1885_v25 }
 0x15d   :  { %v514_v34 = vpop.xlane.xlu0 %513  ;;  %v530_v41 = vpop.xlane.xlu1 %529 }
 0x15e   :  { %v1888_v10 = vmax.f32 %v1883_v9, %v514_v34  ;;  %v1891_v53 = vmax.f32 %v1885_v25, %v530_v41  ;;  %v907_v29 = vpop.xlane.xlu2 %906  ;;  %v1903_v34 = vld [vmem:[#allocation2 + $0x30] sm:$0xff]  ;;  %v1905_v41 = vld [vmem:[#allocation2 + $0x38] sm:$0xff] }
 0x15f   :  { %v932_v5 = vadd.f32 %v907_v29, %v868_v26  ;;  %2259 = vst [vmem:[#allocation11_spill] sm:$0xff] %v1903_v34  ;;  %v869_v25 = vld [vmem:[#allocation4 + $0x38] sm:$0xff] }
 0x160   :  { %2257 = vst [vmem:[#allocation9_spill] sm:$0xff] %v1888_v10  ;;  %617 = vperm.xlu0 %1269, %v1888_v10  }
 0x161   :  { %2258 = vst [vmem:[#allocation10_spill] sm:$0xff] %v1891_v53 }
 0x162   :  { %848 = vst.msk [vmem:[#allocation2 + $0x10] sm:$0xff] %vm21_vm6, %v1888_v10 }
 0x163   :  { %856 = vst.msk [vmem:[#allocation2 + $0x50] sm:$0xff] %vm21_vm6, %v1891_v53 }
 0x164   :  { %948 = vst.msk [vmem:[#allocation4 + $0x30] sm:$0xff] %vm21_vm6, %v932_v5 }
 0x165   :  { %2260 = vst [vmem:[#allocation12_spill] sm:$0xff] %v1905_v41  ;;  %v522_v50 = vpop.xlane.xlu0 %521  ;;  %v524_v26 = vpop.xlane.xlu1 %523 }
 0x166   :  { %v1910_v9 = vmax.f32 %v1903_v34, %v522_v50  ;;  %v1913_v29 = vmax.f32 %v1905_v41, %v524_v26  ;;  %v538_v30 = vpop.xlane.xlu2 %537  ;;  %v1957_v26 = vld [vmem:[#allocation2 + $0x58] sm:$0xff] }
 0x167   :  { %v1920_v5 = vmax.f32 %v1907_v11, %v538_v30  ;;  %v864_v30 = vld [vmem:[#allocation4 + $0x10] sm:$0xff]  ;;  %2269 = vst [vmem:[#allocation21_spill] sm:$0xff] %v1957_v26 }
 0x168   :  { %2262 = vst [vmem:[#allocation14_spill] sm:$0xff] %v1910_v9  ;;  %637 = vperm.xlu1 %1270, %v1910_v9   ;;  %657 = vperm.xlu0 %1269, %v1891_v53  }
 0x169   :  { %2263 = vst [vmem:[#allocation15_spill] sm:$0xff] %v1913_v29  ;;  %677 = vperm.xlu2 %1271, %v1920_v5  }
 0x16a   :  { %852 = vst.msk [vmem:[#allocation2 + $0x30] sm:$0xff] %vm21_vm6, %v1910_v9  ;;  %v1933_v9 = vld [vmem:[#allocation2 + $0x18] sm:$0xff] }
 0x16b   :  { %2264 = vst [vmem:[#allocation16_spill] sm:$0xff] %v1920_v5 }
 0x16c   :  { %853 = vst.msk [vmem:[#allocation2 + $0x38] sm:$0xff] %vm21_vm6, %v1913_v29 }
 0x16d   :  { %860 = vst.msk [vmem:[#allocation2 + $0x70] sm:$0xff] %vm21_vm6, %v1920_v5  ;;  %v899_v34 = vpop.xlane.xlu0 %898  ;;  %v909_v50 = vpop.xlane.xlu1 %908 }
 0x16e   :  { %2265 = vst [vmem:[#allocation17_spill] sm:$0xff] %v1933_v9  ;;  %v928_v10 = vadd.f32 %v899_v34, %v864_v30  ;;  %v933_v41 = vadd.f32 %v909_v50, %v869_v25  ;;  %v516_v32 = vpop.xlane.xlu2 %515  ;;  %v1946_v34 = vld [vmem:[#allocation2 + $0x78] sm:$0xff] }
 0x16f   :  { %v1937_v53 = vmax.f32 %v1933_v9, %v516_v32  ;;  %2267 = vst [vmem:[#allocation19_spill] sm:$0xff] %v1946_v34  ;;  %v865_v50 = vld [vmem:[#allocation4 + $0x18] sm:$0xff] }
 0x170   :  { %944 = vst.msk [vmem:[#allocation4 + $0x10] sm:$0xff] %vm21_vm6, %v928_v10  ;;  %642 = vperm.xlu0 %1269, %v1913_v29  }
 0x171   :  { %2266 = vst [vmem:[#allocation18_spill] sm:$0xff] %v1937_v53  ;;  %622 = vperm.xlu1 %1270, %v1937_v53  }
 0x172   :  { %949 = vst.msk [vmem:[#allocation4 + $0x38] sm:$0xff] %vm21_vm6, %v933_v41 }
 0x173   :  { %849 = vst.msk [vmem:[#allocation2 + $0x18] sm:$0xff] %vm21_vm6, %v1937_v53 }
 0x175   :  { %v540_v25 = vpop.xlane.xlu0 %539 }
 0x176   :  { %v1949_v10 = vmax.f32 %v1946_v34, %v540_v25  ;;  %v901_v32 = vpop.xlane.xlu2 %900 }
 0x177   :  { %v929_v30 = vadd.f32 %v901_v32, %v865_v50 }
 0x178   :  { %2268 = vst [vmem:[#allocation20_spill] sm:$0xff] %v1949_v10 }
 0x179   :  { %861 = vst.msk [vmem:[#allocation2 + $0x78] sm:$0xff] %vm21_vm6, %v1949_v10  ;;  %682 = vperm.xlu1 %1270, %v1949_v10  }
 0x17a   :  { %945 = vst.msk [vmem:[#allocation4 + $0x18] sm:$0xff] %vm21_vm6, %v929_v30 }
 0x17e   :  { %v532_v53 = vpop.xlane.xlu2 %531 }
 0x17f   :  { %v1960_v9 = vmax.f32 %v1957_v26, %v532_v53 }
 0x181   :  { %2270 = vst [vmem:[#allocation22_spill] sm:$0xff] %v1960_v9  ;;  %662 = vperm.xlu2 %1271, %v1960_v9  }
 0x182   :  { %857 = vst.msk [vmem:[#allocation2 + $0x58] sm:$0xff] %vm21_vm6, %v1960_v9 }
 0x19b   :  { %v648_v41 = vpop.permute.xlu2 %647 }
 0x19c   :  { %v693_v50 = vsub.f32 %v1554_v1, %v648_v41 }
 0x19e   :  { %v717_v32 = vmul.f32 1.442695, %v693_v50 }
 0x1a0   :  { %1273 = vpow2.f32 %v717_v32 }
 0x1a3   :  { %v613_v30 = vpop.permute.xlu2 %612 }
 0x1a6   :  { %v1274_v10 = vpop.eup %1273 }
 0x1a7   :  { %v741_v34 = vmul.f32 %v1274_v10, %v1574_v8  ;;  %v286_v10 = vadd.s32 96, %v1527_v49 }
 0x1a9   :  { %797 = vadd.xlane.f32.xlu1 %v741_v34  ;;  %vm324_vm3 = vcmp.eq.s32.totalorder %v286_v10, %v1524_v48 }
 0x1aa   :  { %v608_v53 = vpop.permute.xlu1 %607 }
 0x1ab   :  { %v685_v29 = vsub.f32 %v1542_v56, %v608_v53  ;;  %v633_v5 = vpop.permute.xlu2 %632  ;;  %v686_v56 = vsub.f32 %v1581_v15, %v613_v30 }
 0x1ac   :  { %v690_v25 = vsub.f32 %v1602_v24, %v633_v5 }
 0x1ad   :  { %v701_v26 = vmul.f32 1.442695, %v685_v29 }
 0x1ae   :  { %v711_v11 = vmul.f32 1.442695, %v690_v25 }
 0x1af   :  { %1275 = vpow2.f32 %v701_v26 }
 0x1b0   :  { %1277 = vpow2.f32 %v711_v11  ;;  %v703_v11 = vmul.f32 1.442695, %v686_v56 }
 0x1b2   :  { %v668_v9 = vpop.permute.xlu1 %667  ;;  %v628_v57 = vpop.permute.xlu0 %627 }
 0x1b3   :  { %v697_v1 = vsub.f32 %v1556_v2, %v668_v9  ;;  %v689_v41 = vsub.f32 %v1550_v62, %v628_v57  ;;  %v1979_v57 = vsel %vm324_vm3, 0.0, %v1534_v51 }
 0x1b5   :  { %v1276_v50 = vpop.eup %1275  ;;  %v725_v32 = vmul.f32 1.442695, %v697_v1  ;;  %v709_v8 = vmul.f32 1.442695, %v689_v41 }
 0x1b6   :  { %v1278_v34 = vpop.eup %1277  ;;  %v733_v24 = vmul.f32 %v1276_v50, %v1538_v52  ;;  %v287_v50 = vadd.s32 104, %v1527_v49 }
 0x1b7   :  { %1279 = vpow2.f32 %v725_v32  ;;  %v738_v29 = vmul.f32 %v1278_v34, %v1592_v19 }
 0x1b8   :  { %1281 = vpow2.f32 %v709_v8  ;;  %781 = vadd.xlane.f32.xlu0 %v733_v24  ;;  %vm325_vm13 = vcmp.eq.s32.totalorder %v287_v50, %v1524_v48 }
 0x1b9   :  { %791 = vadd.xlane.f32.xlu1 %v738_v29  ;;  %1283 = vpow2.f32 %v703_v11  ;;  %v1990_v10 = vsel %vm325_vm13, 0.0, %v1534_v51 }
 0x1bd   :  { %v1280_v62 = vpop.eup %1279 }
 0x1be   :  { %v1282_v9 = vpop.eup %1281  ;;  %v745_v5 = vmul.f32 %v1280_v62, %v1979_v57 }
 0x1bf   :  { %v737_v15 = vmul.f32 %v1282_v9, %v1570_v6  ;;  %v1284_v52 = vpop.eup %1283 }
 0x1c0   :  { %805 = vadd.xlane.f32.xlu0 %v745_v5  ;;  %v734_v19 = vmul.f32 %v1284_v52, %v1599_v22 }
 0x1c1   :  { %789 = vadd.xlane.f32.xlu2 %v737_v15 }
 0x1c3   :  { %v678_v6 = vpop.permute.xlu2 %677 }
 0x1c9   :  { %783 = vadd.xlane.f32.xlu2 %v734_v19 }
 0x1ca   :  { %v653_v26 = vpop.permute.xlu1 %652  ;;  %v673_v30 = vpop.permute.xlu0 %672 }
 0x1cb   :  { %v694_v25 = vsub.f32 %v1619_v35, %v653_v26  ;;  %v698_v53 = vsub.f32 %v1622_v39, %v673_v30  ;;  %v699_v35 = vsub.f32 %v1665_v14, %v678_v6  ;;  %v288_v26 = vadd.s32 112, %v1527_v49 }
 0x1cc   :  { %v284_v30 = vadd.s32 80, %v1527_v49 }
 0x1cd   :  { %v719_v1 = vmul.f32 1.442695, %v694_v25  ;;  %v727_v41 = vmul.f32 1.442695, %v698_v53  ;;  %v729_v11 = vmul.f32 1.442695, %v699_v35  ;;  %vm326_vm14 = vcmp.eq.s32.totalorder %v288_v26, %v1524_v48 }
 0x1ce   :  { %vm322_vm15 = vcmp.eq.s32.totalorder %v284_v30, %v1524_v48  ;;  %v289_v26 = vadd.s32 120, %v1527_v49 }
 0x1cf   :  { %1285 = vpow2.f32 %v719_v1 }
 0x1d0   :  { %1287 = vpow2.f32 %v727_v41  ;;  %vm327_vm5 = vcmp.eq.s32.totalorder %v289_v26, %v1524_v48 }
 0x1d2   :  { %v618_v32 = vpop.permute.xlu0 %617 }
 0x1d3   :  { %v687_v8 = vsub.f32 %v1635_v59, %v618_v32 }
 0x1d5   :  { %v1286_v22 = vpop.eup %1285  ;;  %v705_v56 = vmul.f32 1.442695, %v687_v8  ;;  %v344_v8 = vsel %vm326_vm14, 0.0, %v1534_v51 }
 0x1d6   :  { %v1288_v34 = vpop.eup %1287  ;;  %v742_v24 = vmul.f32 %v1286_v22, %v1616_v33 }
 0x1d7   :  { %v746_v29 = vmul.f32 %v1288_v34, %v1990_v10  ;;  %1289 = vpow2.f32 %v705_v56 }
 0x1d8   :  { %799 = vadd.xlane.f32.xlu0 %v742_v24  ;;  %1291 = vpow2.f32 %v729_v11  ;;  %v285_v24 = vadd.s32 88, %v1527_v49 }
 0x1d9   :  { %807 = vadd.xlane.f32.xlu2 %v746_v29 }
 0x1da   :  { %v638_v62 = vpop.permute.xlu1 %637  ;;  %v658_v59 = vpop.permute.xlu0 %657  ;;  %vm323_vm4 = vcmp.eq.s32.totalorder %v285_v24, %v1524_v48 }
 0x1db   :  { %v691_v9 = vsub.f32 %v1643_v63, %v638_v62  ;;  %v695_v5 = vsub.f32 %v1637_v60, %v658_v59  ;;  %v663_v15 = vpop.permute.xlu2 %662 }
 0x1dc   :  { %v696_v33 = vsub.f32 %v1746_v55, %v663_v15 }
 0x1dd   :  { %v713_v52 = vmul.f32 1.442695, %v691_v9  ;;  %v1290_v19 = vpop.eup %1289  ;;  %v721_v25 = vmul.f32 1.442695, %v695_v5  ;;  %v341_v5 = vsel %vm323_vm4, 0.0, %v1534_v51 }
 0x1de   :  { %v735_v53 = vmul.f32 %v1290_v19, %v1669_v16  ;;  %v723_v63 = vmul.f32 1.442695, %v696_v33  ;;  %v1292_v41 = vpop.eup %1291  ;;  %v340_v16 = vsel %vm322_vm15, 0.0, %v1534_v51 }
 0x1df   :  { %1293 = vpow2.f32 %v713_v52  ;;  %v747_v11 = vmul.f32 %v1292_v41, %v344_v8 }
 0x1e0   :  { %1295 = vpow2.f32 %v721_v25  ;;  %785 = vadd.xlane.f32.xlu1 %v735_v53  ;;  %v2271_v25 = vmov 0.0  }
 0x1e1   :  { %1297 = vpow2.f32 %v723_v63  ;;  %v1220_v33 = vsel %vm422_vm2, 1.0, %v2271_v25  ;;  %v1222_v53 = vsel %vm424_vm1, 1.0, %v2271_v25  ;;  %vm427_vm2 = vcmp.eq.s32.totalorder %v1797_v3, %v1508_v42 }
 0x1e2   :  { %v643_v1 = vpop.permute.xlu0 %642  ;;  %v470_v63 = vmul.f32 %v1220_v33, %v340_v16  ;;  %v472_v49 = vmul.f32 %v1222_v53, %v1979_v57  ;;  %v1225_v48 = vsel %vm427_vm2, 1.0, %v2271_v25  ;;  %vm426_vm1 = vcmp.eq.s32.totalorder %v1793_v37, %v1508_v42  ;;  %v753_v33 = vld [vmem:[#allocation3 + $0x20] sm:$0xff] }
 0x1e3   :  { %v692_v50 = vsub.f32 %v1659_v13, %v643_v1  ;;  %v623_v6 = vpop.permute.xlu1 %622  ;;  %v1223_v1 = vsel %vm425_vm7, 1.0, %v2271_v25 }
 0x1e4   :  { %v688_v22 = vsub.f32 %v1695_v28, %v623_v6  ;;  %v890_v44 = vmul.f32 %v472_v49, %v1556_v2  ;;  %v473_v58 = vmul.f32 %v1223_v1, %v1990_v10  ;;  %v1224_v6 = vsel %vm426_vm1, 1.0, %v2271_v25 }
 0x1e5   :  { %v1294_v32 = vpop.eup %1293  ;;  %v715_v35 = vmul.f32 1.442695, %v692_v50  ;;  %v474_v43 = vmul.f32 %v1224_v6, %v344_v8  ;;  %v2272_v10 = vsub.f32 %v1812_v18, %v1825_v27  ;;  %v2274_v8 = vsub.f32 %v1850_v21, %v1854_v47  ;;  %v1046_v6 = vld [vmem:[#allocation4 + $0x28] sm:$0xff] }
 0x1e6   :  { %v1296_v34 = vpop.eup %1295  ;;  %v739_v56 = vmul.f32 %v1294_v32, %v1640_v61  ;;  %v707_v29 = vmul.f32 1.442695, %v688_v22  ;;  %v757_v22 = vld [vmem:[#allocation3 + $0x40] sm:$0xff]  ;;  %v2276_v27 = vsub.f32 %v1810_v38, %v1818_v23  ;;  %v2277_v23 = vsub.f32 %v1838_v36, %v1842_v4 }
 0x1e7   :  { %v743_v62 = vmul.f32 %v1296_v34, %v340_v16  ;;  %1299 = vpow2.f32 %v715_v35  ;;  %v1298_v13 = vpop.eup %1297  ;;  %v892_v32 = vmul.f32 %v474_v43, %v1665_v14  ;;  %v583_v35 = vmul.f32 1.442695, %v2274_v8  ;;  %v1065_v38 = vld [vmem:[%s2231_s0 + $0x40] sm:$0xff]  ;;  %v1062_v43 = vld [vmem:[%s2231_s0 + $0x28] sm:$0xff] }
 0x1e8   :  { %793 = vadd.xlane.f32.xlu0 %v739_v56  ;;  %1301 = vpow2.f32 %v707_v29  ;;  %809 = vadd.xlane.f32.xlu1 %v747_v11  ;;  %v744_v52 = vmul.f32 %v1298_v13, %v341_v5  ;;  %v2275_v14 = vsub.f32 %v1808_v12, %v1815_v20  ;;  %v581_v56 = vmul.f32 1.442695, %v2276_v27  ;;  %v754_v11 = vld [vmem:[#allocation3 + $0x28] sm:$0xff]  ;;  %v1049_v12 = vld [vmem:[#allocation4 + $0x40] sm:$0xff] }
 0x1e9   :  { %801 = vadd.xlane.f32.xlu2 %v743_v62  ;;  %v1081_v26 = vmul.f32 %v1065_v38, %v1049_v12  ;;  %v966_v8 = vld [vmem:[#allocation2 + $0x28] sm:$0xff]  ;;  %v965_v38 = vld [vmem:[#allocation2 + $0x20] sm:$0xff] }
 0x1ea   :  { %v597_v18 = vmul.f32 1.442695, %v2275_v14 }
 0x1eb   :  { %v683_v28 = vpop.permute.xlu1 %682 }
 0x1ec   :  { %v700_v9 = vsub.f32 %v1720_v40, %v683_v28 }
 0x1ed   :  { %v1300_v59 = vpop.eup %1299 }
 0x1ee   :  { %v1302_v61 = vpop.eup %1301  ;;  %v731_v15 = vmul.f32 1.442695, %v700_v9  ;;  %v740_v19 = vmul.f32 %v1300_v59, %v1681_v45  ;;  %v345_v45 = vsel %vm327_vm5, 0.0, %v1534_v51  ;;  %v1221_v51 = vsel %vm423_vm0, 1.0, %v2271_v25 }
 0x1ef   :  { %v736_v30 = vmul.f32 %v1302_v61, %v1707_v31  ;;  %v888_v31 = vmul.f32 %v470_v63, %v1637_v60  ;;  %v475_v3 = vmul.f32 %v1225_v48, %v345_v45  ;;  %v471_v57 = vmul.f32 %v1221_v51, %v341_v5 }
 0x1f0   :  { %1303 = vpow2.f32 %v731_v15  ;;  %803 = vadd.xlane.f32.xlu1 %v744_v52  ;;  %v891_v60 = vmul.f32 %v473_v58, %v1622_v39  ;;  %v589_v39 = vmul.f32 1.442695, %v2272_v10  ;;  %v575_v59 = vmul.f32 1.442695, %v2277_v23  ;;  %v969_v15 = vld [vmem:[#allocation2 + $0x40] sm:$0xff]  ;;  %v2280_v10 = vld [vmem:[#allocation6_spill] sm:$0xff] }
 0x1f1   :  { %795 = vadd.xlane.f32.xlu2 %v740_v19  ;;  %787 = vadd.xlane.f32.xlu0 %v736_v30  ;;  %v893_v2 = vmul.f32 %v475_v3, %v1720_v40  ;;  %v889_v50 = vmul.f32 %v471_v57, %v1746_v55  ;;  %v2273_v55 = vsub.f32 %v1795_v0, %v1800_v7  ;;  %v749_v7 = vld [vmem:[#allocation3] sm:$0xff] }
 0x1f2   :  { %1305 = vpow2.f32 %v589_v39  ;;  %v761_v52 = vld [vmem:[#allocation3 + $0x60] sm:$0xff]  ;;  %v2278_v57 = vsub.f32 %v1862_v54, %v1867_v17  ;;  %v1078_v17 = vmul.f32 %v1062_v43, %v1046_v6 }
 0x1f3   :  { %v573_v37 = vmul.f32 1.442695, %v2273_v55  ;;  %v1041_v58 = vld [vmem:[#allocation4] sm:$0xff] }
 0x1f4   :  { %v1057_v3 = vld [vmem:[%s2231_s0] sm:$0xff] }
 0x1f5   :  { %1307 = vpow2.f32 %v573_v37 }
 0x1f6   :  { %v1304_v46 = vpop.eup %1303  ;;  %1309 = vpow2.f32 %v583_v35 }
 0x1f7   :  { %v748_v41 = vmul.f32 %v1304_v46, %v345_v45 }
 0x1f8   :  { %914 = vadd.xlane.f32.xlu1 %v888_v31  ;;  %v1306_v40 = vpop.eup %1305 }
 0x1f9   :  { %918 = vadd.xlane.f32.xlu2 %v890_v44  ;;  %811 = vadd.xlane.f32.xlu0 %v748_v41  ;;  %v773_v34 = vmul.f32 %v1306_v40, %v757_v22  ;;  %v750_v41 = vld [vmem:[#allocation3 + $0x8] sm:$0xff] }
 0x1fb   :  { %v1308_v0 = vpop.eup %1307 }
 0x1fc   :  { %v1310_v29 = vpop.eup %1309  ;;  %v765_v21 = vmul.f32 %v1308_v0, %v749_v7  ;;  %v1045_v0 = vld [vmem:[#allocation4 + $0x20] sm:$0xff] }
 0x1fd   :  { %v770_v62 = vmul.f32 %v1310_v29, %v754_v11  ;;  %v1061_v7 = vld [vmem:[%s2231_s0 + $0x20] sm:$0xff]  ;;  %v2282_v29 = vld [vmem:[#allocation7_spill] sm:$0xff] }
 0x1fe   :  { %v2283_v11 = vld [vmem:[#allocation9_spill] sm:$0xff]  ;;  %v1077_v23 = vmul.f32 %v1061_v7, %v1045_v0  ;;  %v755_v0 = vld [vmem:[#allocation3 + $0x30] sm:$0xff] }
 0x200   :  { %920 = vadd.xlane.f32.xlu1 %v891_v60  ;;  %v591_v60 = vmul.f32 1.442695, %v2278_v57 }
 0x201   :  { %924 = vadd.xlane.f32.xlu2 %v893_v2  ;;  %916 = vadd.xlane.f32.xlu0 %v889_v50 }
 0x209   :  { %922 = vadd.xlane.f32.xlu0 %v892_v32  ;;  %v2279_v32 = vld [vmem:[#allocation5_spill] sm:$0xff] }
 0x20a   :  { %v2281_v39 = vsub.f32 %v2279_v32, %v2280_v10 }
 0x20c   :  { %v599_v40 = vmul.f32 1.442695, %v2281_v39  ;;  %v2294_v39 = vld [vmem:[#allocation12_spill] sm:$0xff] }
 0x21c   :  { %v798_v42 = vpop.xlane.xlu1 %797 }
 0x21d   :  { %v821_v16 = vadd.f32 %v798_v42, %v773_v34  ;;  %v961_v42 = vld [vmem:[#allocation2] sm:$0xff] }
 0x21f   :  { %838 = vst.msk [vmem:[#allocation3 + $0x40] sm:$0xff] %vm21_vm6, %v821_v16  ;;  %v1073_v16 = vmul.f32 %v1057_v3, %v1041_v58 }
 0x226   :  { %v985_v24 = vld [vmem:[#allocation3 + $0x40] sm:$0xff] }
 0x227   :  { %1311 = vlog2.f32 %v985_v24 }
 0x228   :  { %1313 = vpow2.f32 %v597_v18 }
 0x229   :  { %1315 = vpow2.f32 %v581_v56 }
 0x22a   :  { %1317 = vpow2.f32 %v575_v59 }
 0x22b   :  { %v782_v47 = vpop.xlane.xlu0 %781 }
 0x22c   :  { %v813_v13 = vadd.f32 %v782_v47, %v765_v21  ;;  %v792_v28 = vpop.xlane.xlu1 %791  ;;  %v2284_v21 = vsub.f32 %v2282_v29, %v2283_v11  ;;  %v763_v29 = vld [vmem:[#allocation3 + $0x70] sm:$0xff] }
 0x22d   :  { %v1312_v9 = vpop.eup %1311  ;;  %v818_v20 = vadd.f32 %v792_v28, %v770_v62  ;;  %v759_v11 = vld [vmem:[#allocation3 + $0x50] sm:$0xff] }
 0x22e   :  { %v1010_v5 = vmul.f32 0.6931472, %v1312_v9  ;;  %830 = vst.msk [vmem:[#allocation3] sm:$0xff] %vm21_vm6, %v813_v13  ;;  %v1314_v61 = vpop.eup %1313  ;;  %v577_v47 = vmul.f32 1.442695, %v2284_v21  ;;  %v758_v9 = vld [vmem:[#allocation3 + $0x48] sm:$0xff] }
 0x22f   :  { %835 = vst.msk [vmem:[#allocation3 + $0x28] sm:$0xff] %vm21_vm6, %v818_v20  ;;  %v1316_v19 = vpop.eup %1315  ;;  %v777_v53 = vmul.f32 %v1314_v61, %v761_v52  ;;  %v762_v20 = vld [vmem:[#allocation3 + $0x68] sm:$0xff] }
 0x230   :  { %v1033_v25 = vadd.f32 %v1010_v5, %v969_v15  ;;  %v769_v63 = vmul.f32 %v1316_v19, %v753_v33  ;;  %v1318_v1 = vpop.eup %1317  ;;  %v2285_v19 = vld [vmem:[#allocation8_spill] sm:$0xff] }
 0x231   :  { %v766_v48 = vmul.f32 %v1318_v1, %v750_v41  ;;  %v1058_v1 = vld [vmem:[%s2231_s0 + $0x8] sm:$0xff]  ;;  %v2291_v41 = vld [vmem:[#allocation13_spill] sm:$0xff] }
 0x232   :  { %v1097_v30 = vsub.f32 %v1081_v26, %v1033_v25  ;;  %v2286_v26 = vld [vmem:[#allocation10_spill] sm:$0xff] }
 0x233   :  { %v806_v49 = vpop.xlane.xlu0 %805  ;;  %v2287_v25 = vsub.f32 %v2285_v19, %v2286_v26  ;;  %v2303_v26 = vld [vmem:[#allocation19_spill] sm:$0xff] }
 0x234   :  { %v1113_v46 = vmul.f32 -1.0, %v1097_v30  ;;  %v790_v36 = vpop.xlane.xlu2 %789  ;;  %v825_v4 = vadd.f32 %v806_v49, %v777_v53  ;;  %v2289_v49 = vld [vmem:[#allocation14_spill] sm:$0xff] }
 0x235   :  { %v977_v45 = vld [vmem:[#allocation3] sm:$0xff]  ;;  %v817_v31 = vadd.f32 %v790_v36, %v769_v63  ;;  %v593_v33 = vmul.f32 1.442695, %v2287_v25  ;;  %v2288_v63 = vld [vmem:[#allocation11_spill] sm:$0xff]  ;;  %v2304_v25 = vld [vmem:[#allocation20_spill] sm:$0xff] }
 0x236   :  { %1129 = vst.msk [vmem:[%s2232_s4 + $0x40] sm:$0xff] %vm21_vm6, %v1113_v46  ;;  %1319 = vlog2.f32 %v977_v45  ;;  %v982_v44 = vld [vmem:[#allocation3 + $0x28] sm:$0xff]  ;;  %v2290_v46 = vsub.f32 %v2288_v63, %v2289_v49 }
 0x237   :  { %1321 = vlog2.f32 %v982_v44  ;;  %834 = vst.msk [vmem:[#allocation3 + $0x20] sm:$0xff] %vm21_vm6, %v817_v31  ;;  %v1042_v44 = vld [vmem:[#allocation4 + $0x8] sm:$0xff] }
 0x238   :  { %842 = vst.msk [vmem:[#allocation3 + $0x60] sm:$0xff] %vm21_vm6, %v825_v4  ;;  %v585_v36 = vmul.f32 1.442695, %v2290_v46  ;;  %v760_v46 = vld [vmem:[#allocation3 + $0x58] sm:$0xff] }
 0x23c   :  { %v1320_v51 = vpop.eup %1319  ;;  %v784_v2 = vpop.xlane.xlu2 %783 }
 0x23d   :  { %v1322_v50 = vpop.eup %1321  ;;  %v994_v22 = vmul.f32 0.6931472, %v1320_v51  ;;  %v814_v34 = vadd.f32 %v784_v2, %v766_v48  ;;  %v2292_v48 = vld [vmem:[#allocation16_spill] sm:$0xff]  ;;  %v751_v2 = vld [vmem:[#allocation3 + $0x10] sm:$0xff] }
 0x23e   :  { %v1004_v55 = vmul.f32 0.6931472, %v1322_v50  ;;  %v981_v37 = vld [vmem:[#allocation3 + $0x20] sm:$0xff]  ;;  %v2293_v51 = vsub.f32 %v2291_v41, %v2292_v48  ;;  %v1074_v50 = vmul.f32 %v1058_v1, %v1042_v44 }
 0x23f   :  { %v1025_v54 = vadd.f32 %v994_v22, %v961_v42  ;;  %1323 = vlog2.f32 %v981_v37  ;;  %831 = vst.msk [vmem:[#allocation3 + $0x8] sm:$0xff] %vm21_vm6, %v814_v34 }
 0x240   :  { %1325 = vpow2.f32 %v591_v60  ;;  %v1030_v35 = vadd.f32 %v1004_v55, %v966_v8  ;;  %v601_v58 = vmul.f32 1.442695, %v2293_v51  ;;  %v962_v60 = vld [vmem:[#allocation2 + $0x8] sm:$0xff]  ;;  %v2297_v8 = vld [vmem:[#allocation21_spill] sm:$0xff] }
 0x241   :  { %1327 = vpow2.f32 %v599_v40  ;;  %v1089_v14 = vsub.f32 %v1073_v16, %v1025_v54  ;;  %v2295_v40 = vld [vmem:[#allocation15_spill] sm:$0xff]  ;;  %v2298_v54 = vld [vmem:[#allocation22_spill] sm:$0xff] }
 0x242   :  { %v1094_v18 = vsub.f32 %v1078_v17, %v1030_v35  ;;  %v2296_v22 = vsub.f32 %v2294_v39, %v2295_v40  ;;  %v2299_v17 = vsub.f32 %v2297_v8, %v2298_v54  ;;  %v963_v39 = vld [vmem:[#allocation2 + $0x10] sm:$0xff]  ;;  %v874_v8 = vld [vmem:[#allocation4 + $0x60] sm:$0xff] }
 0x243   :  { %v1105_v27 = vmul.f32 -1.0, %v1089_v14 }
 0x244   :  { %v1110_v56 = vmul.f32 -1.0, %v1094_v18  ;;  %v587_v34 = vmul.f32 1.442695, %v2296_v22  ;;  %v595_v35 = vmul.f32 1.442695, %v2299_v17  ;;  %v2300_v18 = vld [vmem:[#allocation17_spill] sm:$0xff] }
 0x245   :  { %v1324_v24 = vpop.eup %1323  ;;  %1121 = vst.msk [vmem:[%s2232_s4] sm:$0xff] %vm21_vm6, %v1105_v27  ;;  %v2301_v27 = vld [vmem:[#allocation18_spill] sm:$0xff] }
 0x246   :  { %v1326_v62 = vpop.eup %1325  ;;  %1126 = vst.msk [vmem:[%s2232_s4 + $0x28] sm:$0xff] %vm21_vm6, %v1110_v56  ;;  %v1002_v13 = vmul.f32 0.6931472, %v1324_v24  ;;  %v978_v28 = vld [vmem:[#allocation3 + $0x8] sm:$0xff]  ;;  %v2302_v56 = vsub.f32 %v2300_v18, %v2301_v27 }
 0x247   :  { %v1328_v12 = vpop.eup %1327  ;;  %1329 = vlog2.f32 %v978_v28  ;;  %v774_v5 = vmul.f32 %v1326_v62, %v758_v9  ;;  %v1050_v9 = vld [vmem:[#allocation4 + $0x48] sm:$0xff] }
 0x248   :  { %v1029_v59 = vadd.f32 %v1002_v13, %v965_v38  ;;  %1331 = vpow2.f32 %v577_v47  ;;  %v778_v52 = vmul.f32 %v1328_v12, %v762_v20  ;;  %v579_v24 = vmul.f32 1.442695, %v2302_v56  ;;  %v1066_v12 = vld [vmem:[%s2231_s0 + $0x48] sm:$0xff] }
 0x249   :  { %1333 = vpow2.f32 %v593_v33  ;;  %v1082_v19 = vmul.f32 %v1066_v12, %v1050_v9  ;;  %v2305_v33 = vsub.f32 %v2303_v26, %v2304_v25 }
 0x24a   :  { %v1093_v61 = vsub.f32 %v1077_v23, %v1029_v59  ;;  %1335 = vpow2.f32 %v585_v36  ;;  %v756_v36 = vld [vmem:[#allocation3 + $0x38] sm:$0xff] }
 0x24b   :  { %v800_v15 = vpop.xlane.xlu0 %799  ;;  %1337 = vpow2.f32 %v601_v58 }
 0x24c   :  { %v822_v30 = vadd.f32 %v800_v15, %v774_v5  ;;  %v808_v53 = vpop.xlane.xlu2 %807  ;;  %v1109_v4 = vmul.f32 -1.0, %v1093_v61  ;;  %v970_v15 = vld [vmem:[#allocation2 + $0x48] sm:$0xff] }
 0x24d   :  { %v826_v45 = vadd.f32 %v808_v53, %v778_v52  ;;  %v1330_v31 = vpop.eup %1329 }
 0x24e   :  { %839 = vst.msk [vmem:[#allocation3 + $0x48] sm:$0xff] %vm21_vm6, %v822_v30  ;;  %v996_v3 = vmul.f32 0.6931472, %v1330_v31  ;;  %v1332_v57 = vpop.eup %1331  ;;  %v603_v30 = vmul.f32 1.442695, %v2305_v33  ;;  %v752_v31 = vld [vmem:[#allocation3 + $0x18] sm:$0xff] }
 0x24f   :  { %1125 = vst.msk [vmem:[%s2232_s4 + $0x20] sm:$0xff] %vm21_vm6, %v1109_v4  ;;  %v767_v32 = vmul.f32 %v1332_v57, %v751_v2  ;;  %v1334_v16 = vpop.eup %1333  ;;  %v1064_v33 = vld [vmem:[%s2231_s0 + $0x38] sm:$0xff] }
 0x250   :  { %843 = vst.msk [vmem:[#allocation3 + $0x68] sm:$0xff] %vm21_vm6, %v826_v45  ;;  %v1026_v6 = vadd.f32 %v996_v3, %v962_v60  ;;  %v1336_v14 = vpop.eup %1335  ;;  %v775_v13 = vmul.f32 %v1334_v16, %v759_v11  ;;  %v872_v16 = vld [vmem:[#allocation4 + $0x50] sm:$0xff] }
 0x251   :  { %v1338_v7 = vpop.eup %1337  ;;  %v771_v21 = vmul.f32 %v1336_v14, %v755_v0  ;;  %v1063_v14 = vld [vmem:[%s2231_s0 + $0x30] sm:$0xff] }
 0x252   :  { %v1090_v43 = vsub.f32 %v1074_v50, %v1026_v6  ;;  %v779_v62 = vmul.f32 %v1338_v7, %v763_v29  ;;  %v1043_v6 = vld [vmem:[#allocation4 + $0x10] sm:$0xff] }
 0x253   :  { %v786_v10 = vpop.xlane.xlu1 %785 }
 0x254   :  { %v1106_v42 = vmul.f32 -1.0, %v1090_v43  ;;  %v815_v37 = vadd.f32 %v786_v10, %v767_v32  ;;  %v1059_v43 = vld [vmem:[%s2231_s0 + $0x10] sm:$0xff] }
 0x255   :  { %v986_v55 = vld [vmem:[#allocation3 + $0x48] sm:$0xff] }
 0x256   :  { %1339 = vlog2.f32 %v986_v55  ;;  %1122 = vst.msk [vmem:[%s2232_s4 + $0x8] sm:$0xff] %vm21_vm6, %v1106_v42  ;;  %v989_v42 = vld [vmem:[#allocation3 + $0x60] sm:$0xff] }
 0x257   :  { %832 = vst.msk [vmem:[#allocation3 + $0x10] sm:$0xff] %vm21_vm6, %v815_v37  ;;  %1341 = vpow2.f32 %v587_v34  ;;  %v1075_v34 = vmul.f32 %v1059_v43, %v1043_v6  ;;  %v764_v37 = vld [vmem:[#allocation3 + $0x78] sm:$0xff] }
 0x258   :  { %1343 = vpow2.f32 %v595_v35  ;;  %v1047_v35 = vld [vmem:[#allocation4 + $0x30] sm:$0xff] }
 0x259   :  { %1345 = vpow2.f32 %v579_v24 }
 0x25b   :  { %v794_v47 = vpop.xlane.xlu0 %793  ;;  %v810_v20 = vpop.xlane.xlu1 %809 }
 0x25c   :  { %v1340_v28 = vpop.eup %1339  ;;  %v819_v38 = vadd.f32 %v794_v47, %v771_v21  ;;  %v802_v23 = vpop.xlane.xlu2 %801  ;;  %v827_v5 = vadd.f32 %v810_v20, %v779_v62  ;;  %v967_v21 = vld [vmem:[#allocation2 + $0x30] sm:$0xff]  ;;  %v1079_v62 = vmul.f32 %v1063_v14, %v1047_v35 }
 0x25d   :  { %v1012_v59 = vmul.f32 0.6931472, %v1340_v28  ;;  %v823_v61 = vadd.f32 %v802_v23, %v775_v13  ;;  %v1342_v52 = vpop.eup %1341  ;;  %v990_v13 = vld [vmem:[#allocation3 + $0x68] sm:$0xff]  ;;  %v876_v14 = vld [vmem:[#allocation4 + $0x70] sm:$0xff] }
 0x25e   :  { %836 = vst.msk [vmem:[#allocation3 + $0x30] sm:$0xff] %vm21_vm6, %v819_v38  ;;  %v979_v63 = vld [vmem:[#allocation3 + $0x10] sm:$0xff]  ;;  %v1344_v49 = vpop.eup %1343  ;;  %v772_v41 = vmul.f32 %v1342_v52, %v756_v36  ;;  %v873_v52 = vld [vmem:[#allocation4 + $0x58] sm:$0xff] }
 0x25f   :  { %v1034_v53 = vadd.f32 %v1012_v59, %v970_v15  ;;  %844 = vst.msk [vmem:[#allocation3 + $0x70] sm:$0xff] %vm21_vm6, %v827_v5  ;;  %1347 = vlog2.f32 %v979_v63  ;;  %v1346_v4 = vpop.eup %1345  ;;  %v776_v1 = vmul.f32 %v1344_v49, %v760_v46  ;;  %v875_v5 = vld [vmem:[#allocation4 + $0x68] sm:$0xff] }
 0x260   :  { %840 = vst.msk [vmem:[#allocation3 + $0x50] sm:$0xff] %vm21_vm6, %v823_v61  ;;  %1349 = vpow2.f32 %v603_v30  ;;  %v768_v58 = vmul.f32 %v1346_v4, %v752_v31  ;;  %v877_v61 = vld [vmem:[#allocation4 + $0x78] sm:$0xff]  ;;  %v1069_v31 = vld [vmem:[%s2231_s0 + $0x60] sm:$0xff] }
 0x261   :  { %v1098_v45 = vsub.f32 %v1082_v19, %v1034_v53  ;;  %v1067_v53 = vld [vmem:[%s2231_s0 + $0x50] sm:$0xff]  ;;  %v1048_v4 = vld [vmem:[#allocation4 + $0x38] sm:$0xff] }
 0x263   :  { %v1114_v44 = vmul.f32 -1.0, %v1098_v45  ;;  %v804_v48 = vpop.xlane.xlu1 %803  ;;  %v1060_v45 = vld [vmem:[%s2231_s0 + $0x18] sm:$0xff] }
 0x264   :  { %v796_v51 = vpop.xlane.xlu2 %795  ;;  %v824_v57 = vadd.f32 %v804_v48, %v776_v1  ;;  %v788_v2 = vpop.xlane.xlu0 %787  ;;  %v1044_v48 = vld [vmem:[#allocation4 + $0x18] sm:$0xff] }
 0x265   :  { %1130 = vst.msk [vmem:[%s2232_s4 + $0x48] sm:$0xff] %vm21_vm6, %v1114_v44  ;;  %v983_v3 = vld [vmem:[#allocation3 + $0x30] sm:$0xff]  ;;  %v820_v60 = vadd.f32 %v796_v51, %v772_v41  ;;  %v1348_v50 = vpop.eup %1347  ;;  %v816_v32 = vadd.f32 %v788_v2, %v768_v58 }
 0x266   :  { %1351 = vlog2.f32 %v983_v3  ;;  %v998_v10 = vmul.f32 0.6931472, %v1348_v50  ;;  %841 = vst.msk [vmem:[#allocation3 + $0x58] sm:$0xff] %vm21_vm6, %v824_v57  ;;  %v1350_v22 = vpop.eup %1349  ;;  %v971_v41 = vld [vmem:[#allocation2 + $0x50] sm:$0xff]  ;;  %v973_v57 = vld [vmem:[#allocation2 + $0x60] sm:$0xff] }
 0x267   :  { %v987_v40 = vld [vmem:[#allocation3 + $0x50] sm:$0xff]  ;;  %837 = vst.msk [vmem:[#allocation3 + $0x38] sm:$0xff] %vm21_vm6, %v820_v60  ;;  %v780_v56 = vmul.f32 %v1350_v22, %v764_v37  ;;  %v968_v60 = vld [vmem:[#allocation2 + $0x38] sm:$0xff] }
 0x268   :  { %v1027_v55 = vadd.f32 %v998_v10, %v963_v39  ;;  %833 = vst.msk [vmem:[#allocation3 + $0x18] sm:$0xff] %vm21_vm6, %v816_v32  ;;  %1353 = vlog2.f32 %v987_v40  ;;  %v1080_v32 = vmul.f32 %v1064_v33, %v1048_v4  ;;  %v964_v10 = vld [vmem:[#allocation2 + $0x18] sm:$0xff]  ;;  %v991_v37 = vld [vmem:[#allocation3 + $0x70] sm:$0xff] }
 0x269   :  { %1355 = vlog2.f32 %v989_v42  ;;  %v1071_v4 = vld [vmem:[%s2231_s0 + $0x70] sm:$0xff] }
 0x26a   :  { %v1091_v54 = vsub.f32 %v1075_v34, %v1027_v55  ;;  %v1076_v55 = vmul.f32 %v1060_v45, %v1044_v48  ;;  %v975_v45 = vld [vmem:[#allocation2 + $0x70] sm:$0xff] }
 0x26b   :  { %v915_v18 = vpop.xlane.xlu1 %914 }
 0x26c   :  { %v1352_v17 = vpop.eup %1351  ;;  %v919_v27 = vpop.xlane.xlu2 %918  ;;  %v1107_v24 = vmul.f32 -1.0, %v1091_v54  ;;  %v936_v7 = vadd.f32 %v915_v18, %v872_v16 }
 0x26d   :  { %v1006_v0 = vmul.f32 0.6931472, %v1352_v17  ;;  %v938_v29 = vadd.f32 %v919_v27, %v874_v8  ;;  %v812_v11 = vpop.xlane.xlu0 %811  ;;  %v988_v23 = vld [vmem:[#allocation3 + $0x58] sm:$0xff] }
 0x26e   :  { %v828_v47 = vadd.f32 %v812_v11, %v780_v56  ;;  %1123 = vst.msk [vmem:[%s2232_s4 + $0x10] sm:$0xff] %vm21_vm6, %v1107_v24  ;;  %v984_v9 = vld [vmem:[#allocation3 + $0x38] sm:$0xff]  ;;  %v1354_v38 = vpop.eup %1353  ;;  %v1070_v56 = vld [vmem:[%s2231_s0 + $0x68] sm:$0xff] }
 0x26f   :  { %v1031_v28 = vadd.f32 %v1006_v0, %v967_v21  ;;  %1357 = vlog2.f32 %v984_v9  ;;  %v980_v12 = vld [vmem:[#allocation3 + $0x18] sm:$0xff]  ;;  %952 = vst.msk [vmem:[#allocation4 + $0x50] sm:$0xff] %vm21_vm6, %v936_v7  ;;  %v1356_v59 = vpop.eup %1355  ;;  %v1014_v19 = vmul.f32 0.6931472, %v1354_v38  ;;  %v974_v11 = vld [vmem:[#allocation2 + $0x68] sm:$0xff] }
 0x270   :  { %1359 = vlog2.f32 %v980_v12  ;;  %954 = vst.msk [vmem:[#allocation4 + $0x60] sm:$0xff] %vm21_vm6, %v938_v29  ;;  %v1018_v30 = vmul.f32 0.6931472, %v1356_v59 }
 0x271   :  { %v1095_v20 = vsub.f32 %v1079_v62, %v1031_v28  ;;  %1361 = vlog2.f32 %v990_v13  ;;  %845 = vst.msk [vmem:[#allocation3 + $0x78] sm:$0xff] %vm21_vm6, %v828_v47  ;;  %v1035_v50 = vadd.f32 %v1014_v19, %v971_v41  ;;  %v1068_v62 = vld [vmem:[%s2231_s0 + $0x58] sm:$0xff] }
 0x272   :  { %1363 = vlog2.f32 %v988_v23  ;;  %v1037_v40 = vadd.f32 %v1018_v30, %v973_v57  ;;  %v972_v28 = vld [vmem:[#allocation2 + $0x58] sm:$0xff] }
 0x273   :  { %v1111_v15 = vmul.f32 -1.0, %v1095_v20  ;;  %v921_v26 = vpop.xlane.xlu1 %920  ;;  %v1072_v23 = vld [vmem:[%s2231_s0 + $0x78] sm:$0xff] }
 0x274   :  { %v925_v25 = vpop.xlane.xlu2 %924  ;;  %v939_v63 = vadd.f32 %v921_v26, %v875_v5  ;;  %v976_v19 = vld [vmem:[#allocation2 + $0x78] sm:$0xff] }
 0x275   :  { %1127 = vst.msk [vmem:[%s2232_s4 + $0x30] sm:$0xff] %vm21_vm6, %v1111_v15  ;;  %v941_v49 = vadd.f32 %v925_v25, %v877_v61  ;;  %v917_v46 = vpop.xlane.xlu0 %916  ;;  %v1358_v36 = vpop.eup %1357 }
 0x276   :  { %v937_v44 = vadd.f32 %v917_v46, %v873_v52  ;;  %v1360_v1 = vpop.eup %1359  ;;  %v1008_v51 = vmul.f32 0.6931472, %v1358_v36  ;;  %v1051_v58 = vld [vmem:[#allocation4 + $0x50] sm:$0xff]  ;;  %955 = vst.msk [vmem:[#allocation4 + $0x68] sm:$0xff] %vm21_vm6, %v939_v63 }
 0x277   :  { %v1362_v3 = vpop.eup %1361  ;;  %v1000_v2 = vmul.f32 0.6931472, %v1360_v1  ;;  %v1083_v6 = vmul.f32 %v1067_v53, %v1051_v58  ;;  %v1053_v43 = vld [vmem:[#allocation4 + $0x60] sm:$0xff]  ;;  %957 = vst.msk [vmem:[#allocation4 + $0x78] sm:$0xff] %vm21_vm6, %v941_v49 }
 0x278   :  { %v1032_v39 = vadd.f32 %v1008_v51, %v968_v60  ;;  %v1085_v22 = vmul.f32 %v1069_v31, %v1053_v43  ;;  %v992_v34 = vld [vmem:[#allocation3 + $0x78] sm:$0xff]  ;;  %953 = vst.msk [vmem:[#allocation4 + $0x58] sm:$0xff] %vm21_vm6, %v937_v44  ;;  %v1364_v42 = vpop.eup %1363  ;;  %v1020_v54 = vmul.f32 0.6931472, %v1362_v3 }
 0x279   :  { %v1028_v16 = vadd.f32 %v1000_v2, %v964_v10  ;;  %v1099_v8 = vsub.f32 %v1083_v6, %v1035_v50  ;;  %1365 = vlog2.f32 %v992_v34  ;;  %v1016_v24 = vmul.f32 0.6931472, %v1364_v42 }
 0x27a   :  { %v1096_v17 = vsub.f32 %v1080_v32, %v1032_v39  ;;  %v1101_v35 = vsub.f32 %v1085_v22, %v1037_v40  ;;  %1367 = vlog2.f32 %v991_v37  ;;  %v1038_v9 = vadd.f32 %v1020_v54, %v974_v11 }
 0x27b   :  { %v1092_v18 = vsub.f32 %v1076_v55, %v1028_v16  ;;  %v1115_v27 = vmul.f32 -1.0, %v1099_v8  ;;  %v1036_v15 = vadd.f32 %v1016_v24, %v972_v28 }
 0x27c   :  { %v1112_v0 = vmul.f32 -1.0, %v1096_v17  ;;  %v1117_v7 = vmul.f32 -1.0, %v1101_v35 }
 0x27d   :  { %v923_v29 = vpop.xlane.xlu0 %922  ;;  %v1108_v21 = vmul.f32 -1.0, %v1092_v18  ;;  %1131 = vst.msk [vmem:[%s2232_s4 + $0x50] sm:$0xff] %vm21_vm6, %v1115_v27  ;;  %v1054_v47 = vld [vmem:[#allocation4 + $0x68] sm:$0xff] }
 0x27e   :  { %v940_v13 = vadd.f32 %v923_v29, %v876_v14  ;;  %1128 = vst.msk [vmem:[%s2232_s4 + $0x38] sm:$0xff] %vm21_vm6, %v1112_v0  ;;  %v1086_v12 = vmul.f32 %v1070_v56, %v1054_v47  ;;  %v1056_v20 = vld [vmem:[#allocation4 + $0x78] sm:$0xff] }
 0x27f   :  { %v1366_v38 = vpop.eup %1365  ;;  %1124 = vst.msk [vmem:[%s2232_s4 + $0x18] sm:$0xff] %vm21_vm6, %v1108_v21  ;;  %v1052_v59 = vld [vmem:[#allocation4 + $0x58] sm:$0xff]  ;;  %v1088_v30 = vmul.f32 %v1072_v23, %v1056_v20 }
 0x280   :  { %1133 = vst.msk [vmem:[%s2232_s4 + $0x60] sm:$0xff] %vm21_vm6, %v1117_v7  ;;  %v1024_v5 = vmul.f32 0.6931472, %v1366_v38  ;;  %v1102_v61 = vsub.f32 %v1086_v12, %v1038_v9  ;;  %v1084_v52 = vmul.f32 %v1068_v62, %v1052_v59  ;;  %v1368_v26 = vpop.eup %1367 }
 0x281   :  { %956 = vst.msk [vmem:[#allocation4 + $0x70] sm:$0xff] %vm21_vm6, %v940_v13  ;;  %v1022_v46 = vmul.f32 0.6931472, %v1368_v26 }
 0x282   :  { %v1118_v25 = vmul.f32 -1.0, %v1102_v61  ;;  %v1040_v33 = vadd.f32 %v1024_v5, %v976_v19  ;;  %v1100_v53 = vsub.f32 %v1084_v52, %v1036_v15 }
 0x283   :  { %v1039_v44 = vadd.f32 %v1022_v46, %v975_v45 }
 0x284   :  { %1134 = vst.msk [vmem:[%s2232_s4 + $0x68] sm:$0xff] %vm21_vm6, %v1118_v25  ;;  %v1104_v63 = vsub.f32 %v1088_v30, %v1040_v33  ;;  %v1116_v49 = vmul.f32 -1.0, %v1100_v53 }
 0x286   :  { %v1120_v36 = vmul.f32 -1.0, %v1104_v63  ;;  %1132 = vst.msk [vmem:[%s2232_s4 + $0x58] sm:$0xff] %vm21_vm6, %v1116_v49 }
 0x288   :  { %1136 = vst.msk [vmem:[%s2232_s4 + $0x78] sm:$0xff] %vm21_vm6, %v1120_v36  ;;  %v1055_v31 = vld [vmem:[#allocation4 + $0x70] sm:$0xff] }
 0x289   :  { %v1087_v1 = vmul.f32 %v1071_v4, %v1055_v31 }
 0x28b   :  { %v1103_v41 = vsub.f32 %v1087_v1, %v1039_v44 }
 0x28d   :  { %v1119_v48 = vmul.f32 -1.0, %v1103_v41 }
 0x28f   :  { %1135 = vst.msk [vmem:[%s2232_s4 + $0x70] sm:$0xff] %vm21_vm6, %v1119_v48 }

</bundles_post_ra>
